<compile_context>
chip_gen: v7x
topology: tpu7x:2x2x1
jax: 0.10.0
libtpu: 0.0.40
codegen_flags: <defaults>
</compile_context>

<pallas_src>
import jax
import jax.numpy as jnp
from jax.experimental import pallas as pl
from jax.experimental.pallas import tpu as pltpu

# ---- model hyper-parameters (MusicCNN) --------------------------------------
B      = 2      # batch
C_OUT  = 32     # output_channels
KH     = 3      # conv kernel height (kernel_size=(3, 1))
H      = 18     # input height  -> H_OUT = 16 (multiple of 8, sublane aligned)
W      = 128    # input width   -> full 128-lane vregs, lane-dense stores
H_OUT  = H - KH + 1
M      = C_OUT * H_OUT         # rows of the fused Toeplitz matmul (512)
NEG_SLOPE = 0.2                # LeakyReLU(0.2)


def musiccnn_kernel(x_ref, t_ref, b_ref, o_ref):
    # x_ref: (B, H, W)   t_ref: (M, H)   b_ref: (M, 1)   o_ref: (B, M, W)
    t = t_ref[...]                                             # (M, H)
    bias_full = jnp.broadcast_to(b_ref[...], (M, W))           # hoisted once

    # Static unroll over the (tiny) batch: one fused MXU matmul per element,
    # output written as a lane-dense (M, W) slab in NCHW row order.
    for bi in range(B):
        y = jnp.dot(t, x_ref[bi], preferred_element_type=jnp.float32) + bias_full
        o_ref[bi] = jnp.where(y > 0, y, NEG_SLOPE * y)         # LeakyReLU(0.2)


def precompute_params(weight, bias):
    """One-time weight transform (NOT in the per-call path).

    weight: (C_OUT, 1, KH, 1) PyTorch Conv2d layout; bias: (C_OUT,)
    Returns the Toeplitz matrix (M, H) and a per-row bias column (M, 1).
    """
    wk = weight[:, 0, :, 0]                                    # (C_OUT, KH)
    h_idx  = jnp.arange(H_OUT)[:, None]                        # (H_OUT, 1)
    hp_idx = jnp.arange(H)[None, :]                            # (1, H)
    k = hp_idx - h_idx                                         # (H_OUT, H)
    valid = (k >= 0) & (k < KH)
    k_clip = jnp.clip(k, 0, KH - 1)
    t = jnp.where(valid[None, :, :], wk[:, k_clip], 0.0)       # (C_OUT, H_OUT, H)
    t = t.reshape(M, H).astype(jnp.float32)
    b_col = jnp.repeat(bias, H_OUT).reshape(M, 1).astype(jnp.float32)
    return t, b_col


@jax.jit
def musiccnn_forward(x_nchw, t, b_col):
    """x_nchw: (B, 1, H, W) float32, same layout as the PyTorch module."""
    x = x_nchw[:, 0, :, :]                                     # (B, H, W)

    out = pl.pallas_call(
        musiccnn_kernel,
        out_shape=jax.ShapeDtypeStruct((B, M, W), jnp.float32),
        grid=(1,),                                             # single pipeline step
        in_specs=[
            pl.BlockSpec((B, H, W), lambda i: (0, 0, 0)),      # whole batch at once
            pl.BlockSpec((M, H),    lambda i: (0, 0)),         # Toeplitz weights
            pl.BlockSpec((M, 1),    lambda i: (0, 0)),         # bias column
        ],
        out_specs=pl.BlockSpec((B, M, W), lambda i: (0, 0, 0)),
        compiler_params=pltpu.CompilerParams(
            dimension_semantics=("arbitrary",)),
    )(x, t, b_col)

    return out.reshape(B, C_OUT, H_OUT, W)                     # free reshape (NCHW)


# ---- pure-JAX reference (mirrors PyTorch Conv2d + LeakyReLU semantics) ------
def musiccnn_reference(x_nchw, weight, bias):
    x = x_nchw[:, 0]                                           # (B, H, W)
    wk = weight[:, 0, :, 0]                                    # (C_OUT, KH)
    y = jnp.zeros((B, C_OUT, H_OUT, W), jnp.float32)
    for k in range(KH):
        y = y + wk[None, :, k, None, None] * x[:, None, k:k + H_OUT, :]
    y = y + bias[None, :, None, None]
    return jnp.where(y > 0, y, NEG_SLOPE * y)
    # TODO(synk): the PyTorch forward also print()s tensor shapes; that debug
    # side effect has no tensor-op equivalent and is intentionally omitted.


if __name__ == "__main__":
    key = jax.random.PRNGKey(0)
    kx, kw = jax.random.split(key, 2)

    x = jax.random.normal(kx, (B, 1, H, W), jnp.float32)
    # Module init: weights = torch.randn(...), bias = torch.zeros(...)
    weight = jax.random.normal(kw, (C_OUT, 1, KH, 1), jnp.float32)
    bias = jnp.zeros((C_OUT,), jnp.float32)

    # Hoisted one-time parameter transform (not in the per-call path).
    t, b_col = precompute_params(weight, bias)

    out = jax.block_until_ready(musiccnn_forward(x, t, b_col))
    ref = jax.block_until_ready(musiccnn_reference(x, weight, bias))

    assert out.shape == (B, C_OUT, H_OUT, W), out.shape
    err = float(jnp.max(jnp.abs(out - ref)))
    assert jnp.allclose(out, ref, rtol=1e-4, atol=1e-4), f"max abs err = {err}"
    print("KERNEL_OK")
</pallas_src>

<mosaic_0001>
module attributes {stable_mosaic.version = 11 : i64} {
  func.func @musiccnn_kernel(%arg0: i32, %arg1: memref<2x18x128xf32, #tpu.memory_space<vmem>>, %arg2: memref<512x18xf32, #tpu.memory_space<vmem>>, %arg3: memref<512x1xf32, #tpu.memory_space<vmem>>, %arg4: memref<2x512x128xf32, #tpu.memory_space<vmem>>) attributes {dimension_semantics = [#tpu.dimension_semantics<arbitrary>], iteration_bounds = array<i64: 1>, scalar_prefetch = 0 : i64, scratch_operands = 0 : i64, tpu.core_type = #tpu.core_type<tc>, window_params = [{pipeline_mode = #tpu.pipeline_mode<synchronous>, transform_indices = @transform_0, window_bounds = array<i64: 2, 18, 128>}, {pipeline_mode = #tpu.pipeline_mode<synchronous>, transform_indices = @transform_1, window_bounds = array<i64: 512, 18>}, {pipeline_mode = #tpu.pipeline_mode<synchronous>, transform_indices = @transform_2, window_bounds = array<i64: 512, 1>}, {pipeline_mode = #tpu.pipeline_mode<synchronous>, transform_indices = @transform_3, window_bounds = array<i64: 2, 512, 128>}]} {
    %c0 = arith.constant 0 : index
    %c0_0 = arith.constant 0 : index
    %0 = vector.load %arg2[%c0, %c0_0] : memref<512x18xf32, #tpu.memory_space<vmem>>, vector<512x18xf32>
    %c0_1 = arith.constant 0 : index
    %c0_2 = arith.constant 0 : index
    %1 = vector.load %arg3[%c0_1, %c0_2] : memref<512x1xf32, #tpu.memory_space<vmem>>, vector<512x1xf32>
    %2 = vector.shape_cast %1 : vector<512x1xf32> to vector<512x1xf32>
    %3 = vector.broadcast %2 : vector<512x1xf32> to vector<512x128xf32>
    %c0_3 = arith.constant 0 : index
    %c0_4 = arith.constant 0 : index
    %c0_5 = arith.constant 0 : index
    %4 = vector.load %arg1[%c0_3, %c0_4, %c0_5] : memref<2x18x128xf32, #tpu.memory_space<vmem>>, vector<1x18x128xf32>
    %5 = vector.shape_cast %4 : vector<1x18x128xf32> to vector<18x128xf32>
    %cst = arith.constant dense<0.000000e+00> : vector<512x128xf32>
    %6 = tpu.matmul %0, %5, %cst {dimension_numbers = #tpu.dot_dimension_numbers<[1], [0], [0], [1], [0, 0, 1, 1], [], []>} : vector<512x18xf32>, vector<18x128xf32>, vector<512x128xf32> -> vector<512x128xf32>
    %7 = arith.addf %6, %3 : vector<512x128xf32>
    %cst_6 = arith.constant 0.000000e+00 : f32
    %8 = vector.broadcast %cst_6 : f32 to vector<512x128xf32>
    %9 = arith.cmpf ogt, %7, %8 : vector<512x128xf32>
    %cst_7 = arith.constant 2.000000e-01 : f32
    %10 = vector.broadcast %cst_7 : f32 to vector<512x128xf32>
    %11 = arith.mulf %10, %7 : vector<512x128xf32>
    %12 = arith.select %9, %7, %11 : vector<512x128xi1>, vector<512x128xf32>
    %c0_8 = arith.constant 0 : index
    %c0_9 = arith.constant 0 : index
    %c0_10 = arith.constant 0 : index
    %13 = vector.load %arg4[%c0_8, %c0_9, %c0_10] : memref<2x512x128xf32, #tpu.memory_space<vmem>>, vector<1x512x128xf32>
    %14 = vector.shape_cast %13 : vector<1x512x128xf32> to vector<512x128xf32>
    %15 = vector.shape_cast %12 : vector<512x128xf32> to vector<1x512x128xf32>
    tpu.vector_store %arg4[%c0_8, %c0_9, %c0_10], %15 {strides = array<i32>} : memref<2x512x128xf32, #tpu.memory_space<vmem>>, vector<1x512x128xf32>,
    %c1 = arith.constant 1 : index
    %c0_11 = arith.constant 0 : index
    %c0_12 = arith.constant 0 : index
    %16 = vector.load %arg1[%c1, %c0_11, %c0_12] : memref<2x18x128xf32, #tpu.memory_space<vmem>>, vector<1x18x128xf32>
    %17 = vector.shape_cast %16 : vector<1x18x128xf32> to vector<18x128xf32>
    %cst_13 = arith.constant dense<0.000000e+00> : vector<512x128xf32>
    %18 = tpu.matmul %0, %17, %cst_13 {dimension_numbers = #tpu.dot_dimension_numbers<[1], [0], [0], [1], [0, 0, 1, 1], [], []>} : vector<512x18xf32>, vector<18x128xf32>, vector<512x128xf32> -> vector<512x128xf32>
    %19 = arith.addf %18, %3 : vector<512x128xf32>
    %cst_14 = arith.constant 0.000000e+00 : f32
    %20 = vector.broadcast %cst_14 : f32 to vector<512x128xf32>
    %21 = arith.cmpf ogt, %19, %20 : vector<512x128xf32>
    %cst_15 = arith.constant 2.000000e-01 : f32
    %22 = vector.broadcast %cst_15 : f32 to vector<512x128xf32>
    %23 = arith.mulf %22, %19 : vector<512x128xf32>
    %24 = arith.select %21, %19, %23 : vector<512x128xi1>, vector<512x128xf32>
    %c1_16 = arith.constant 1 : index
    %c0_17 = arith.constant 0 : index
    %c0_18 = arith.constant 0 : index
    %25 = vector.load %arg4[%c1_16, %c0_17, %c0_18] : memref<2x512x128xf32, #tpu.memory_space<vmem>>, vector<1x512x128xf32>
    %26 = vector.shape_cast %25 : vector<1x512x128xf32> to vector<512x128xf32>
    %27 = vector.shape_cast %24 : vector<512x128xf32> to vector<1x512x128xf32>
    tpu.vector_store %arg4[%c1_16, %c0_17, %c0_18], %27 {strides = array<i32>} : memref<2x512x128xf32, #tpu.memory_space<vmem>>, vector<1x512x128xf32>,
    return
  }
  func.func @transform_0(%arg0: i32) -> (i32, i32, i32) {
    %c0_i32 = arith.constant 0 : i32
    %c0_i32_0 = arith.constant 0 : i32
    %c0_i32_1 = arith.constant 0 : i32
    %c0_i32_2 = arith.constant 0 : i32
    return %c0_i32, %c0_i32_0, %c0_i32_1 : i32, i32, i32
  }
  func.func @transform_1(%arg0: i32) -> (i32, i32) {
    %c0_i32 = arith.constant 0 : i32
    %c0_i32_0 = arith.constant 0 : i32
    %c0_i32_1 = arith.constant 0 : i32
    return %c0_i32, %c0_i32_0 : i32, i32
  }
  func.func @transform_2(%arg0: i32) -> (i32, i32) {
    %c0_i32 = arith.constant 0 : i32
    %c0_i32_0 = arith.constant 0 : i32
    %c0_i32_1 = arith.constant 0 : i32
    return %c0_i32, %c0_i32_0 : i32, i32
  }
  func.func @transform_3(%arg0: i32) -> (i32, i32, i32) {
    %c0_i32 = arith.constant 0 : i32
    %c0_i32_0 = arith.constant 0 : i32
    %c0_i32_1 = arith.constant 0 : i32
    %c0_i32_2 = arith.constant 0 : i32
    return %c0_i32, %c0_i32_0, %c0_i32_1 : i32, i32, i32
  }
}

</mosaic_0001>

<bundles_post_ra>
// kernel: musiccnn_forward.1
= control target key start
LH: loop header
LB: loop body
LE: loop exit
PB: predicated region body
PF: predicated region fallthrough
CT: control target
= control target key end

     0   :  { %v2478_v3 = vmov 0   ;;  %vm659_vm0 = vcmask 1041408   ;;  %vm466_vm1 = vcmask 146432   ;;  %s3272_s0 = inlined_call_operand.vmem [shape: f32[2,18,128], index: 0, kind: input, shape index: {}]   ;;  %s3273_s1 = inlined_call_operand.vmem [shape: f32[512,18], index: 1, kind: input, shape index: {}]   ;;  %s3274_s2 = inlined_call_operand.vmem [shape: f32[512,1], index: 2, kind: input, shape index: {}]   ;;  %s3275_s3 = inlined_call_operand.hbm [shape: f32[2,512,128], index: 3, kind: output, shape index: {}]  }
   0x1   :  { %v81_v0 = vld [vmem:[%s3274_s2 + $0x10] sm:$0xff]  ;;  %v79_v1 = vld [vmem:[%s3274_s2] sm:$0xff]  ;;  %2453 = vset.pattern.permute.xlu1 %v2478_v3  ;;  %2452 = vset.pattern.permute.xlu0 %v2478_v3  ;;  %v464_v4 = vld [vmem:[%s3272_s0 + $0x8] sm:$0xff] }
   0x2   :  { %v463_v2 = vld [vmem:[%s3272_s0] sm:$0xff]  ;;  %v2034_v5 = vld [vmem:[%s3272_s0 + $0x18] sm:$0xff]  ;;  %155 = vperm.xlu1 %2453, %v81_v0   ;;  %145 = vperm.xlu0 %2452, %v79_v1   ;;  %v80_v10 = vld [vmem:[%s3274_s2 + $0x8] sm:$0xff] }
   0x3   :  { %v2035_v6 = vld [vmem:[%s3272_s0 + $0x20] sm:$0xff]  ;;  %v2440_v7 = vpack.c.bf16 %v464_v4, %v463_v2  ;;  %v82_v9 = vld [vmem:[%s3274_s2 + $0x18] sm:$0xff]  ;;  %v465_v11 = vld [vmem:[%s3272_s0 + $0x10] sm:$0x3] }
   0x4   :  { %v2444_v8 = vpack.c.bf16 %v2035_v6, %v2034_v5  ;;  %v2036_v12 = vld [vmem:[%s3272_s0 + $0x28] sm:$0x3]  ;;  %v15_v13 = vld [vmem:[%s3273_s1] sm:$0xff]  ;;  %v17_v17 = vld [vmem:[%s3273_s1 + $0x10] sm:$0xff] }
   0x5   :  { %2441 = vmatprep.subr.bf16.mxu0 %v2440_v7  ;;  %v16_v14 = vld [vmem:[%s3273_s1 + $0x8] sm:$0xff]  ;;  %2242 = vmatprep.mubr.msk.f32.mxu0 %vm466_vm1, %v15_v13  ;;  %v83_v16 = vld [vmem:[%s3274_s2 + $0x20] sm:$0xff]  ;;  %v18_v18 = vld [vmem:[%s3273_s1 + $0x18] sm:$0xff] }
   0x6   :  { %2445 = vmatprep.subr.bf16.mxu1 %v2444_v8  ;;  %2443 = vmatpush3.bf16.msra.mxu0 %v2440_v7  ;;  %v84_v15 = vld [vmem:[%s3274_s2 + $0x28] sm:$0xff]  ;;  %v86_v19 = vld [vmem:[%s3274_s2 + $0x38] sm:$0xff]  ;;  %v85_v20 = vld [vmem:[%s3274_s2 + $0x30] sm:$0xff] }
   0x7   :  { %2447 = vmatpush3.bf16.msra.mxu1 %v2444_v8  ;;  %160 = vperm.xlu1 %2453, %v82_v9   ;;  %v19_v21 = vld [vmem:[%s3273_s1 + $0x20] sm:$0xff]  ;;  %v20_v22 = vld [vmem:[%s3273_s1 + $0x28] sm:$0xff]  ;;  %v21_v25 = vld [vmem:[%s3273_s1 + $0x30] sm:$0xff] }
   0x8   :  { %150 = vperm.xlu0 %2452, %v80_v10   ;;  %2240 = vmatprep.subr.msk.mxu0 %vm659_vm0, %v465_v11  ;;  %v88_v23 = vld [vmem:[%s3274_s2 + $0x48] sm:$0xff]  ;;  %v87_v24 = vld [vmem:[%s3274_s2 + $0x40] sm:$0xff]  ;;  %v22_v26 = vld [vmem:[%s3273_s1 + $0x38] sm:$0xff] }
   0x9   :  { %2342 = vmatprep.subr.msk.mxu1 %vm659_vm0, %v2036_v12  ;;  %2344 = vmatprep.mubr.msk.f32.mxu1 %vm466_vm1, %v15_v13  ;;  %v90_v27 = vld [vmem:[%s3274_s2 + $0x58] sm:$0xff]  ;;  %v89_v28 = vld [vmem:[%s3274_s2 + $0x50] sm:$0xff]  ;;  %v23_v29 = vld [vmem:[%s3273_s1 + $0x40] sm:$0xff] }
   0xa   :  { %2241 = vmatpush3.msk.msra.mxu0 %vm659_vm0, %v465_v11  ;;  %v24_v30 = vld [vmem:[%s3273_s1 + $0x48] sm:$0xff]  ;;  %v91_v32 = vld [vmem:[%s3274_s2 + $0x60] sm:$0xff]  ;;  %v25_v33 = vld [vmem:[%s3273_s1 + $0x50] sm:$0xff] }
   0xb   :  { %2343 = vmatpush3.msk.msra.mxu1 %vm659_vm0, %v2036_v12  ;;  %2243 = vmatmul.mubr.msk.f32.vlgmr.msra.gmra.mrb[0].mxu0 %vm466_vm1, %v16_v14  ;;  %v92_v31 = vld [vmem:[%s3274_s2 + $0x68] sm:$0xff]  ;;  %v26_v34 = vld [vmem:[%s3273_s1 + $0x58] sm:$0xff]  ;;  %v93_v36 = vld [vmem:[%s3274_s2 + $0x70] sm:$0xff] }
   0xc   :  { %2345 = vmatmul.mubr.msk.f32.vlgmr.msra.gmra.mrb[0].mxu1 %vm466_vm1, %v16_v14  ;;  %170 = vperm.xlu1 %2453, %v84_v15   ;;  %v94_v35 = vld [vmem:[%s3274_s2 + $0x78] sm:$0xff]  ;;  %v27_v37 = vld [vmem:[%s3273_s1 + $0x60] sm:$0xff]  ;;  %v28_v38 = vld [vmem:[%s3273_s1 + $0x68] sm:$0xff] }
   0xd   :  { %165 = vperm.xlu0 %2452, %v83_v16   ;;  %2245 = vmatprep.mubr.msk.f32.mxu0 %vm466_vm1, %v17_v17  ;;  %v96_v39 = vld [vmem:[%s3274_s2 + $0x88] sm:$0xff]  ;;  %v95_v40 = vld [vmem:[%s3274_s2 + $0x80] sm:$0xff]  ;;  %v29_v41 = vld [vmem:[%s3273_s1 + $0x70] sm:$0xff] }
   0xe   :  { %2347 = vmatprep.mubr.msk.f32.mxu1 %vm466_vm1, %v17_v17  ;;  %v30_v42 = vld [vmem:[%s3273_s1 + $0x78] sm:$0xff]  ;;  %v97_v44 = vld [vmem:[%s3274_s2 + $0x90] sm:$0xff]  ;;  %v31_v45 = vld [vmem:[%s3273_s1 + $0x80] sm:$0xff] }
   0xf   :  { %2246 = vmatmul.mubr.msk.f32.gmra.mrb[2].mxu0 %vm466_vm1, %v18_v18  ;;  %v98_v43 = vld [vmem:[%s3274_s2 + $0x98] sm:$0xff]  ;;  %v32_v46 = vld [vmem:[%s3273_s1 + $0x88] sm:$0xff]  ;;  %v99_v48 = vld [vmem:[%s3274_s2 + $0xa0] sm:$0xff] }
  0x10   :  { %2348 = vmatmul.mubr.msk.f32.gmra.mrb[2].mxu1 %vm466_vm1, %v18_v18  ;;  %180 = vperm.xlu1 %2453, %v86_v19   ;;  %v100_v47 = vld [vmem:[%s3274_s2 + $0xa8] sm:$0xff]  ;;  %v33_v49 = vld [vmem:[%s3273_s1 + $0x90] sm:$0xff]  ;;  %v34_v50 = vld [vmem:[%s3273_s1 + $0x98] sm:$0xff] }
  0x11   :  { %175 = vperm.xlu0 %2452, %v85_v20   ;;  %2248 = vmatprep.mubr.msk.f32.mxu0 %vm466_vm1, %v19_v21  ;;  %v102_v51 = vld [vmem:[%s3274_s2 + $0xb8] sm:$0xff]  ;;  %v101_v52 = vld [vmem:[%s3274_s2 + $0xb0] sm:$0xff] }
  0x12   :  { %2350 = vmatprep.mubr.msk.f32.mxu1 %vm466_vm1, %v19_v21 }
  0x13   :  { %2249 = vmatmul.mubr.msk.f32.gmra.mrb[4].mxu0 %vm466_vm1, %v20_v22 }
  0x14   :  { %2351 = vmatmul.mubr.msk.f32.gmra.mrb[4].mxu1 %vm466_vm1, %v20_v22  ;;  %190 = vperm.xlu1 %2453, %v88_v23  }
  0x15   :  { %185 = vperm.xlu0 %2452, %v87_v24   ;;  %2251 = vmatprep.mubr.msk.f32.mxu0 %vm466_vm1, %v21_v25 }
  0x16   :  { %2353 = vmatprep.mubr.msk.f32.mxu1 %vm466_vm1, %v21_v25 }
  0x17   :  { %2252 = vmatmul.mubr.msk.f32.gmra.mrb[6].mxu0 %vm466_vm1, %v22_v26 }
  0x18   :  { %2354 = vmatmul.mubr.msk.f32.gmra.mrb[6].mxu1 %vm466_vm1, %v22_v26  ;;  %200 = vperm.xlu1 %2453, %v90_v27  }
  0x19   :  { %195 = vperm.xlu0 %2452, %v89_v28   ;;  %2254 = vmatprep.mubr.msk.f32.mxu0 %vm466_vm1, %v23_v29 }
  0x1a   :  { %2356 = vmatprep.mubr.msk.f32.mxu1 %vm466_vm1, %v23_v29 }
  0x1b   :  { %2255 = vmatmul.mubr.msk.f32.gmra.mrb[8].mxu0 %vm466_vm1, %v24_v30 }
  0x1c   :  { %2357 = vmatmul.mubr.msk.f32.gmra.mrb[8].mxu1 %vm466_vm1, %v24_v30  ;;  %210 = vperm.xlu1 %2453, %v92_v31  }
  0x1d   :  { %205 = vperm.xlu0 %2452, %v91_v32   ;;  %2257 = vmatprep.mubr.msk.f32.mxu0 %vm466_vm1, %v25_v33 }
  0x1e   :  { %2359 = vmatprep.mubr.msk.f32.mxu1 %vm466_vm1, %v25_v33 }
  0x1f   :  { %2258 = vmatmul.mubr.msk.f32.gmra.mrb[10].mxu0 %vm466_vm1, %v26_v34 }
  0x20   :  { %2360 = vmatmul.mubr.msk.f32.gmra.mrb[10].mxu1 %vm466_vm1, %v26_v34  ;;  %220 = vperm.xlu1 %2453, %v94_v35  }
  0x21   :  { %215 = vperm.xlu0 %2452, %v93_v36   ;;  %2260 = vmatprep.mubr.msk.f32.mxu0 %vm466_vm1, %v27_v37 }
  0x22   :  { %2362 = vmatprep.mubr.msk.f32.mxu1 %vm466_vm1, %v27_v37 }
  0x23   :  { %2261 = vmatmul.mubr.msk.f32.gmra.mrb[12].mxu0 %vm466_vm1, %v28_v38 }
  0x24   :  { %2363 = vmatmul.mubr.msk.f32.gmra.mrb[12].mxu1 %vm466_vm1, %v28_v38  ;;  %230 = vperm.xlu1 %2453, %v96_v39  }
  0x25   :  { %225 = vperm.xlu0 %2452, %v95_v40   ;;  %2263 = vmatprep.mubr.msk.f32.mxu0 %vm466_vm1, %v29_v41 }
  0x26   :  { %2365 = vmatprep.mubr.msk.f32.mxu1 %vm466_vm1, %v29_v41 }
  0x27   :  { %2264 = vmatmul.mubr.msk.f32.gmra.mrb[14].mxu0 %vm466_vm1, %v30_v42 }
  0x28   :  { %2366 = vmatmul.mubr.msk.f32.gmra.mrb[14].mxu1 %vm466_vm1, %v30_v42  ;;  %240 = vperm.xlu1 %2453, %v98_v43  }
  0x29   :  { %235 = vperm.xlu0 %2452, %v97_v44   ;;  %2266 = vmatprep.mubr.msk.f32.mxu0 %vm466_vm1, %v31_v45 }
  0x2a   :  { %2368 = vmatprep.mubr.msk.f32.mxu1 %vm466_vm1, %v31_v45 }
  0x2b   :  { %2267 = vmatmul.mubr.msk.f32.gmra.mrb[16].mxu0 %vm466_vm1, %v32_v46 }
  0x2c   :  { %2369 = vmatmul.mubr.msk.f32.gmra.mrb[16].mxu1 %vm466_vm1, %v32_v46  ;;  %250 = vperm.xlu1 %2453, %v100_v47  }
  0x2d   :  { %245 = vperm.xlu0 %2452, %v99_v48   ;;  %2269 = vmatprep.mubr.msk.f32.mxu0 %vm466_vm1, %v33_v49 }
  0x2e   :  { %2371 = vmatprep.mubr.msk.f32.mxu1 %vm466_vm1, %v33_v49 }
  0x2f   :  { %8 = vsyncpa [#allocation3], 0  ;;  %v35_v53 = vld [vmem:[%s3273_s1 + $0xa0] sm:$0xff]  ;;  %2270 = vmatmul.mubr.msk.f32.gmra.mrb[18].mxu0 %vm466_vm1, %v34_v50  ;;  %v36_v54 = vld [vmem:[%s3273_s1 + $0xa8] sm:$0xff] }
  0x30   :  { %2372 = vmatmul.mubr.msk.f32.gmra.mrb[18].mxu1 %vm466_vm1, %v34_v50  ;;  %260 = vperm.xlu1 %2453, %v102_v51   ;;  %v104_v55 = vld [vmem:[%s3274_s2 + $0xc8] sm:$0xff]  ;;  %v103_v56 = vld [vmem:[%s3274_s2 + $0xc0] sm:$0xff]  ;;  %v37_v57 = vld [vmem:[%s3273_s1 + $0xb0] sm:$0xff] }
  0x31   :  { %255 = vperm.xlu0 %2452, %v101_v52   ;;  %2272 = vmatprep.mubr.msk.f32.mxu0 %vm466_vm1, %v35_v53  ;;  %v38_v58 = vld [vmem:[%s3273_s1 + $0xb8] sm:$0xff]  ;;  %v105_v60 = vld [vmem:[%s3274_s2 + $0xd0] sm:$0xff]  ;;  %v39_v61 = vld [vmem:[%s3273_s1 + $0xc0] sm:$0xff] }
  0x32   :  { %2374 = vmatprep.mubr.msk.f32.mxu1 %vm466_vm1, %v35_v53  ;;  %v106_v59 = vld [vmem:[%s3274_s2 + $0xd8] sm:$0xff]  ;;  %v40_v62 = vld [vmem:[%s3273_s1 + $0xc8] sm:$0xff]  ;;  %v107_v0 = vld [vmem:[%s3274_s2 + $0xe0] sm:$0xff] }
  0x33   :  { %2273 = vmatmul.mubr.msk.f32.gmra.mrb[20].mxu0 %vm466_vm1, %v36_v54  ;;  %v108_v63 = vld [vmem:[%s3274_s2 + $0xe8] sm:$0xff]  ;;  %v41_v1 = vld [vmem:[%s3273_s1 + $0xd0] sm:$0xff]  ;;  %v42_v2 = vld [vmem:[%s3273_s1 + $0xd8] sm:$0xff] }
  0x34   :  { %2375 = vmatmul.mubr.msk.f32.gmra.mrb[20].mxu1 %vm466_vm1, %v36_v54  ;;  %270 = vperm.xlu1 %2453, %v104_v55   ;;  %v110_v3 = vld [vmem:[%s3274_s2 + $0xf8] sm:$0xff]  ;;  %v109_v4 = vld [vmem:[%s3274_s2 + $0xf0] sm:$0xff]  ;;  %v43_v5 = vld [vmem:[%s3273_s1 + $0xe0] sm:$0xff] }
  0x35   :  { %265 = vperm.xlu0 %2452, %v103_v56   ;;  %2275 = vmatprep.mubr.msk.f32.mxu0 %vm466_vm1, %v37_v57  ;;  %v44_v6 = vld [vmem:[%s3273_s1 + $0xe8] sm:$0xff]  ;;  %v111_v8 = vld [vmem:[%s3274_s2 + $0x100] sm:$0xff]  ;;  %v45_v9 = vld [vmem:[%s3273_s1 + $0xf0] sm:$0xff] }
  0x36   :  { %2377 = vmatprep.mubr.msk.f32.mxu1 %vm466_vm1, %v37_v57  ;;  %v112_v7 = vld [vmem:[%s3274_s2 + $0x108] sm:$0xff]  ;;  %v46_v10 = vld [vmem:[%s3273_s1 + $0xf8] sm:$0xff]  ;;  %v113_v12 = vld [vmem:[%s3274_s2 + $0x110] sm:$0xff] }
  0x37   :  { %2276 = vmatmul.mubr.msk.f32.gmra.mrb[22].mxu0 %vm466_vm1, %v38_v58  ;;  %v114_v11 = vld [vmem:[%s3274_s2 + $0x118] sm:$0xff]  ;;  %v47_v13 = vld [vmem:[%s3273_s1 + $0x100] sm:$0xff]  ;;  %v48_v14 = vld [vmem:[%s3273_s1 + $0x108] sm:$0xff] }
  0x38   :  { %2378 = vmatmul.mubr.msk.f32.gmra.mrb[22].mxu1 %vm466_vm1, %v38_v58  ;;  %280 = vperm.xlu1 %2453, %v106_v59   ;;  %v116_v15 = vld [vmem:[%s3274_s2 + $0x128] sm:$0xff]  ;;  %v115_v16 = vld [vmem:[%s3274_s2 + $0x120] sm:$0xff]  ;;  %v49_v17 = vld [vmem:[%s3273_s1 + $0x110] sm:$0xff] }
  0x39   :  { %275 = vperm.xlu0 %2452, %v105_v60   ;;  %2278 = vmatprep.mubr.msk.f32.mxu0 %vm466_vm1, %v39_v61  ;;  %v50_v18 = vld [vmem:[%s3273_s1 + $0x118] sm:$0xff]  ;;  %v117_v20 = vld [vmem:[%s3274_s2 + $0x130] sm:$0xff]  ;;  %v51_v21 = vld [vmem:[%s3273_s1 + $0x120] sm:$0xff] }
  0x3a   :  { %2380 = vmatprep.mubr.msk.f32.mxu1 %vm466_vm1, %v39_v61  ;;  %v118_v19 = vld [vmem:[%s3274_s2 + $0x138] sm:$0xff]  ;;  %v52_v22 = vld [vmem:[%s3273_s1 + $0x128] sm:$0xff]  ;;  %v119_v24 = vld [vmem:[%s3274_s2 + $0x140] sm:$0xff] }
  0x3b   :  { %2279 = vmatmul.mubr.msk.f32.gmra.mrb[24].mxu0 %vm466_vm1, %v40_v62  ;;  %v120_v23 = vld [vmem:[%s3274_s2 + $0x148] sm:$0xff]  ;;  %v53_v25 = vld [vmem:[%s3273_s1 + $0x130] sm:$0xff]  ;;  %v54_v26 = vld [vmem:[%s3273_s1 + $0x138] sm:$0xff] }
  0x3c   :  { %2381 = vmatmul.mubr.msk.f32.gmra.mrb[24].mxu1 %vm466_vm1, %v40_v62  ;;  %290 = vperm.xlu1 %2453, %v108_v63   ;;  %v122_v27 = vld [vmem:[%s3274_s2 + $0x158] sm:$0xff]  ;;  %v121_v28 = vld [vmem:[%s3274_s2 + $0x150] sm:$0xff]  ;;  %v55_v29 = vld [vmem:[%s3273_s1 + $0x140] sm:$0xff] }
  0x3d   :  { %285 = vperm.xlu0 %2452, %v107_v0   ;;  %2281 = vmatprep.mubr.msk.f32.mxu0 %vm466_vm1, %v41_v1  ;;  %v56_v30 = vld [vmem:[%s3273_s1 + $0x148] sm:$0xff]  ;;  %v123_v32 = vld [vmem:[%s3274_s2 + $0x160] sm:$0xff]  ;;  %v57_v33 = vld [vmem:[%s3273_s1 + $0x150] sm:$0xff] }
  0x3e   :  { %2383 = vmatprep.mubr.msk.f32.mxu1 %vm466_vm1, %v41_v1  ;;  %v124_v31 = vld [vmem:[%s3274_s2 + $0x168] sm:$0xff]  ;;  %v58_v34 = vld [vmem:[%s3273_s1 + $0x158] sm:$0xff]  ;;  %v125_v36 = vld [vmem:[%s3274_s2 + $0x170] sm:$0xff] }
  0x3f   :  { %2282 = vmatmul.mubr.msk.f32.gmra.mrb[26].mxu0 %vm466_vm1, %v42_v2  ;;  %v126_v35 = vld [vmem:[%s3274_s2 + $0x178] sm:$0xff]  ;;  %v59_v37 = vld [vmem:[%s3273_s1 + $0x160] sm:$0xff]  ;;  %v60_v38 = vld [vmem:[%s3273_s1 + $0x168] sm:$0xff] }
  0x40   :  { %2384 = vmatmul.mubr.msk.f32.gmra.mrb[26].mxu1 %vm466_vm1, %v42_v2  ;;  %300 = vperm.xlu1 %2453, %v110_v3   ;;  %v128_v39 = vld [vmem:[%s3274_s2 + $0x188] sm:$0xff]  ;;  %v127_v40 = vld [vmem:[%s3274_s2 + $0x180] sm:$0xff]  ;;  %v61_v41 = vld [vmem:[%s3273_s1 + $0x170] sm:$0xff] }
  0x41   :  { %295 = vperm.xlu0 %2452, %v109_v4   ;;  %2284 = vmatprep.mubr.msk.f32.mxu0 %vm466_vm1, %v43_v5  ;;  %v62_v42 = vld [vmem:[%s3273_s1 + $0x178] sm:$0xff]  ;;  %v129_v44 = vld [vmem:[%s3274_s2 + $0x190] sm:$0xff]  ;;  %v63_v45 = vld [vmem:[%s3273_s1 + $0x180] sm:$0xff] }
  0x42   :  { %2386 = vmatprep.mubr.msk.f32.mxu1 %vm466_vm1, %v43_v5  ;;  %v130_v43 = vld [vmem:[%s3274_s2 + $0x198] sm:$0xff]  ;;  %v64_v46 = vld [vmem:[%s3273_s1 + $0x188] sm:$0xff]  ;;  %v131_v48 = vld [vmem:[%s3274_s2 + $0x1a0] sm:$0xff] }
  0x43   :  { %2285 = vmatmul.mubr.msk.f32.gmra.mrb[28].mxu0 %vm466_vm1, %v44_v6  ;;  %v132_v47 = vld [vmem:[%s3274_s2 + $0x1a8] sm:$0xff]  ;;  %v65_v49 = vld [vmem:[%s3273_s1 + $0x190] sm:$0xff]  ;;  %v66_v50 = vld [vmem:[%s3273_s1 + $0x198] sm:$0xff] }
  0x44   :  { %2387 = vmatmul.mubr.msk.f32.gmra.mrb[28].mxu1 %vm466_vm1, %v44_v6  ;;  %310 = vperm.xlu1 %2453, %v112_v7   ;;  %v134_v51 = vld [vmem:[%s3274_s2 + $0x1b8] sm:$0xff]  ;;  %v133_v52 = vld [vmem:[%s3274_s2 + $0x1b0] sm:$0xff]  ;;  %v67_v53 = vld [vmem:[%s3273_s1 + $0x1a0] sm:$0xff] }
  0x45   :  { %305 = vperm.xlu0 %2452, %v111_v8   ;;  %2287 = vmatprep.mubr.msk.f32.mxu0 %vm466_vm1, %v45_v9  ;;  %v68_v54 = vld [vmem:[%s3273_s1 + $0x1a8] sm:$0xff]  ;;  %v135_v56 = vld [vmem:[%s3274_s2 + $0x1c0] sm:$0xff]  ;;  %v69_v57 = vld [vmem:[%s3273_s1 + $0x1b0] sm:$0xff] }
  0x46   :  { %2389 = vmatprep.mubr.msk.f32.mxu1 %vm466_vm1, %v45_v9  ;;  %v136_v55 = vld [vmem:[%s3274_s2 + $0x1c8] sm:$0xff]  ;;  %v70_v58 = vld [vmem:[%s3273_s1 + $0x1b8] sm:$0xff]  ;;  %v137_v60 = vld [vmem:[%s3274_s2 + $0x1d0] sm:$0xff] }
  0x47   :  { %2288 = vmatmul.mubr.msk.f32.gmra.mrb[30].mxu0 %vm466_vm1, %v46_v10  ;;  %v138_v59 = vld [vmem:[%s3274_s2 + $0x1d8] sm:$0xff]  ;;  %v71_v61 = vld [vmem:[%s3273_s1 + $0x1c0] sm:$0xff]  ;;  %v72_v62 = vld [vmem:[%s3273_s1 + $0x1c8] sm:$0xff] }
  0x48   :  { %2390 = vmatmul.mubr.msk.f32.gmra.mrb[30].mxu1 %vm466_vm1, %v46_v10  ;;  %320 = vperm.xlu1 %2453, %v114_v11   ;;  %v140_v63 = vld [vmem:[%s3274_s2 + $0x1e8] sm:$0xff]  ;;  %v139_v0 = vld [vmem:[%s3274_s2 + $0x1e0] sm:$0xff]  ;;  %v73_v1 = vld [vmem:[%s3273_s1 + $0x1d0] sm:$0xff] }
  0x49   :  { %315 = vperm.xlu0 %2452, %v113_v12   ;;  %2290 = vmatprep.mubr.msk.f32.mxu0 %vm466_vm1, %v47_v13  ;;  %v74_v2 = vld [vmem:[%s3273_s1 + $0x1d8] sm:$0xff]  ;;  %v141_v4 = vld [vmem:[%s3274_s2 + $0x1f0] sm:$0xff]  ;;  %v75_v5 = vld [vmem:[%s3273_s1 + $0x1e0] sm:$0xff] }
  0x4a   :  { %2392 = vmatprep.mubr.msk.f32.mxu1 %vm466_vm1, %v47_v13  ;;  %v142_v3 = vld [vmem:[%s3274_s2 + $0x1f8] sm:$0xff]  ;;  %v76_v6 = vld [vmem:[%s3273_s1 + $0x1e8] sm:$0xff]  ;;  %v77_v7 = vld [vmem:[%s3273_s1 + $0x1f0] sm:$0xff] }
  0x4b   :  { %2291 = vmatmul.mubr.msk.f32.gmra.mrb[32].mxu0 %vm466_vm1, %v48_v14  ;;  %v78_v8 = vld [vmem:[%s3273_s1 + $0x1f8] sm:$0xff]  ;;  %s2479_s1 = smov [#allocation2]  }
  0x4c   :  { %2393 = vmatmul.mubr.msk.f32.gmra.mrb[32].mxu1 %vm466_vm1, %v48_v14  ;;  %330 = vperm.xlu1 %2453, %v116_v15   ;;  %s1958_s27 = sshll.u32 %s2479_s1, 4  ;;  %s1959_s27 = int_to_ptr.vmem [resolvable:$true] %s1958_s27 }
  0x4d   :  { %325 = vperm.xlu0 %2452, %v115_v16   ;;  %2293 = vmatprep.mubr.msk.f32.mxu0 %vm466_vm1, %v49_v17  ;;  %s2454_s28 = scalar_lea.vmem %s1959_s27, 16384  ;;  %p2459_p1 = scmp.lt.s32.totalorder %s1959_s27, %s1959_s27 }
  0x4e   :  { %2395 = vmatprep.mubr.msk.f32.mxu1 %vm466_vm1, %v49_v17  ;;  %p2455_p0 = scmp.ne.s32.totalorder %s1959_s27, %s2454_s28  ;;  %p2460_p2 = scmp.lt.s32.totalorder %s2454_s28, %s2454_s28 }
  0x4f   :  { %2294 = vmatmul.mubr.msk.f32.gmra.mrb[34].mxu0 %vm466_vm1, %v50_v18 }
  0x50   :  { %2396 = vmatmul.mubr.msk.f32.gmra.mrb[34].mxu1 %vm466_vm1, %v50_v18  ;;  %340 = vperm.xlu1 %2453, %v118_v19   ;;  %p2461_p3 = por %p2460_p2, %p2459_p1 }
  0x51   :  { %335 = vperm.xlu0 %2452, %v117_v20   ;;  %2296 = vmatprep.mubr.msk.f32.mxu0 %vm466_vm1, %v51_v21 }
  0x52   :  { %2398 = vmatprep.mubr.msk.f32.mxu1 %vm466_vm1, %v51_v21  ;;  %p2462_p4 = pnand %p2461_p3, %p2455_p0 }
  0x53   :  { %2297 = vmatmul.mubr.msk.f32.gmra.mrb[36].mxu0 %vm466_vm1, %v52_v22 }
  0x54   :  { %2399 = vmatmul.mubr.msk.f32.gmra.mrb[36].mxu1 %vm466_vm1, %v52_v22  ;;  %350 = vperm.xlu1 %2453, %v120_v23  }
  0x55   :  { %345 = vperm.xlu0 %2452, %v119_v24   ;;  %2299 = vmatprep.mubr.msk.f32.mxu0 %vm466_vm1, %v53_v25 }
  0x56   :  { %2401 = vmatprep.mubr.msk.f32.mxu1 %vm466_vm1, %v53_v25 }
  0x57   :  { %2300 = vmatmul.mubr.msk.f32.gmra.mrb[38].mxu0 %vm466_vm1, %v54_v26 }
  0x58   :  { %2402 = vmatmul.mubr.msk.f32.gmra.mrb[38].mxu1 %vm466_vm1, %v54_v26  ;;  %360 = vperm.xlu1 %2453, %v122_v27  }
  0x59   :  { %355 = vperm.xlu0 %2452, %v121_v28   ;;  %2302 = vmatprep.mubr.msk.f32.mxu0 %vm466_vm1, %v55_v29 }
  0x5a   :  { %2404 = vmatprep.mubr.msk.f32.mxu1 %vm466_vm1, %v55_v29 }
  0x5b   :  { %2303 = vmatmul.mubr.msk.f32.gmra.mrb[40].mxu0 %vm466_vm1, %v56_v30 }
  0x5c   :  { %2405 = vmatmul.mubr.msk.f32.gmra.mrb[40].mxu1 %vm466_vm1, %v56_v30  ;;  %370 = vperm.xlu1 %2453, %v124_v31  }
  0x5d   :  { %365 = vperm.xlu0 %2452, %v123_v32   ;;  %2305 = vmatprep.mubr.msk.f32.mxu0 %vm466_vm1, %v57_v33 }
  0x5e   :  { %2407 = vmatprep.mubr.msk.f32.mxu1 %vm466_vm1, %v57_v33 }
  0x5f   :  { %2306 = vmatmul.mubr.msk.f32.gmra.mrb[42].mxu0 %vm466_vm1, %v58_v34 }
  0x60   :  { %2408 = vmatmul.mubr.msk.f32.gmra.mrb[42].mxu1 %vm466_vm1, %v58_v34  ;;  %380 = vperm.xlu1 %2453, %v126_v35  }
  0x61   :  { %375 = vperm.xlu0 %2452, %v125_v36   ;;  %2308 = vmatprep.mubr.msk.f32.mxu0 %vm466_vm1, %v59_v37 }
  0x62   :  { %2410 = vmatprep.mubr.msk.f32.mxu1 %vm466_vm1, %v59_v37 }
  0x63   :  { %2309 = vmatmul.mubr.msk.f32.gmra.mrb[44].mxu0 %vm466_vm1, %v60_v38 }
  0x64   :  { %2411 = vmatmul.mubr.msk.f32.gmra.mrb[44].mxu1 %vm466_vm1, %v60_v38  ;;  %390 = vperm.xlu1 %2453, %v128_v39  }
  0x65   :  { %385 = vperm.xlu0 %2452, %v127_v40   ;;  %2311 = vmatprep.mubr.msk.f32.mxu0 %vm466_vm1, %v61_v41 }
  0x66   :  { %2413 = vmatprep.mubr.msk.f32.mxu1 %vm466_vm1, %v61_v41 }
  0x67   :  { %2312 = vmatmul.mubr.msk.f32.gmra.mrb[46].mxu0 %vm466_vm1, %v62_v42 }
  0x68   :  { %2414 = vmatmul.mubr.msk.f32.gmra.mrb[46].mxu1 %vm466_vm1, %v62_v42  ;;  %400 = vperm.xlu1 %2453, %v130_v43  }
  0x69   :  { %395 = vperm.xlu0 %2452, %v129_v44   ;;  %2314 = vmatprep.mubr.msk.f32.mxu0 %vm466_vm1, %v63_v45 }
  0x6a   :  { %2416 = vmatprep.mubr.msk.f32.mxu1 %vm466_vm1, %v63_v45 }
  0x6b   :  { %2315 = vmatmul.mubr.msk.f32.gmra.mrb[48].mxu0 %vm466_vm1, %v64_v46 }
  0x6c   :  { %2417 = vmatmul.mubr.msk.f32.gmra.mrb[48].mxu1 %vm466_vm1, %v64_v46  ;;  %410 = vperm.xlu1 %2453, %v132_v47  }
  0x6d   :  { %405 = vperm.xlu0 %2452, %v131_v48   ;;  %2317 = vmatprep.mubr.msk.f32.mxu0 %vm466_vm1, %v65_v49 }
  0x6e   :  { %2419 = vmatprep.mubr.msk.f32.mxu1 %vm466_vm1, %v65_v49 }
  0x6f   :  { %2318 = vmatmul.mubr.msk.f32.gmra.mrb[50].mxu0 %vm466_vm1, %v66_v50 }
  0x70   :  { %2420 = vmatmul.mubr.msk.f32.gmra.mrb[50].mxu1 %vm466_vm1, %v66_v50  ;;  %420 = vperm.xlu1 %2453, %v134_v51  }
  0x71   :  { %415 = vperm.xlu0 %2452, %v133_v52   ;;  %2320 = vmatprep.mubr.msk.f32.mxu0 %vm466_vm1, %v67_v53 }
  0x72   :  { %2422 = vmatprep.mubr.msk.f32.mxu1 %vm466_vm1, %v67_v53 }
  0x73   :  { %2321 = vmatmul.mubr.msk.f32.gmra.mrb[52].mxu0 %vm466_vm1, %v68_v54 }
  0x74   :  { %2423 = vmatmul.mubr.msk.f32.gmra.mrb[52].mxu1 %vm466_vm1, %v68_v54  ;;  %430 = vperm.xlu1 %2453, %v136_v55  }
  0x75   :  { %425 = vperm.xlu0 %2452, %v135_v56   ;;  %2323 = vmatprep.mubr.msk.f32.mxu0 %vm466_vm1, %v69_v57 }
  0x76   :  { %2425 = vmatprep.mubr.msk.f32.mxu1 %vm466_vm1, %v69_v57 }
  0x77   :  { %2324 = vmatmul.mubr.msk.f32.gmra.mrb[54].mxu0 %vm466_vm1, %v70_v58 }
  0x78   :  { %2426 = vmatmul.mubr.msk.f32.gmra.mrb[54].mxu1 %vm466_vm1, %v70_v58  ;;  %440 = vperm.xlu1 %2453, %v138_v59  }
  0x79   :  { %435 = vperm.xlu0 %2452, %v137_v60   ;;  %2326 = vmatprep.mubr.msk.f32.mxu0 %vm466_vm1, %v71_v61 }
  0x7a   :  { %2428 = vmatprep.mubr.msk.f32.mxu1 %vm466_vm1, %v71_v61 }
  0x7b   :  { %2327 = vmatmul.mubr.msk.f32.gmra.mrb[56].mxu0 %vm466_vm1, %v72_v62 }
  0x7c   :  { %2429 = vmatmul.mubr.msk.f32.gmra.mrb[56].mxu1 %vm466_vm1, %v72_v62  ;;  %450 = vperm.xlu1 %2453, %v140_v63  }
  0x7d   :  { %445 = vperm.xlu0 %2452, %v139_v0   ;;  %2329 = vmatprep.mubr.msk.f32.mxu0 %vm466_vm1, %v73_v1 }
  0x7e   :  { %2431 = vmatprep.mubr.msk.f32.mxu1 %vm466_vm1, %v73_v1 }
  0x7f   :  { %2330 = vmatmul.mubr.msk.f32.gmra.mrb[58].mxu0 %vm466_vm1, %v74_v2 }
  0x80   :  { %2432 = vmatmul.mubr.msk.f32.gmra.mrb[58].mxu1 %vm466_vm1, %v74_v2  ;;  %460 = vperm.xlu1 %2453, %v142_v3  }
  0x81   :  { %455 = vperm.xlu0 %2452, %v141_v4   ;;  %2332 = vmatprep.mubr.msk.f32.mxu0 %vm466_vm1, %v75_v5  ;;  %v3036_v9 = vpop.permute.xlu1 %155  ;;  %v146_v10 = vpop.permute.xlu0 %145 }
  0x82   :  { %2434 = vmatprep.mubr.msk.f32.mxu1 %vm466_vm1, %v75_v5 }
  0x83   :  { %2333 = vmatmul.mubr.msk.f32.gmra.mrb[60].mxu0 %vm466_vm1, %v76_v6 }
  0x84   :  { %2435 = vmatmul.mubr.msk.f32.gmra.mrb[60].mxu1 %vm466_vm1, %v76_v6  ;;  %2335 = vmatprep.mubr.msk.f32.mxu0 %vm466_vm1, %v77_v7 }
  0x85   :  { %2437 = vmatprep.mubr.msk.f32.mxu1 %vm466_vm1, %v77_v7 }
  0x86   :  { %v161_v11 = vpop.permute.xlu1 %160 }
  0x87   :  { %2336 = vmatmul.mubr.msk.f32.gmra.mrb[62].mxu0 %vm466_vm1, %v78_v8  ;;  %v151_v12 = vpop.permute.xlu0 %150 }
  0x88   :  { %2438 = vmatmul.mubr.msk.f32.gmra.mrb[62].mxu1 %vm466_vm1, %v78_v8 }
  0x8b   :  { %v3038_v13 = vpop.permute.xlu1 %170 }
  0x8c   :  { %v3040_v14 = vpop.permute.xlu0 %165 }
  0x8f   :  { %v3042_v15 = vpop.permute.xlu1 %180 }
  0x90   :  { %v3044_v16 = vpop.permute.xlu0 %175 }
  0x93   :  { %v3046_v17 = vpop.permute.xlu1 %190 }
  0x94   :  { %v3048_v18 = vpop.permute.xlu0 %185 }
  0x97   :  { %v3050_v19 = vpop.permute.xlu1 %200 }
  0x98   :  { %v3052_v20 = vpop.permute.xlu0 %195 }
  0x9b   :  { %v3054_v21 = vpop.permute.xlu1 %210 }
  0x9c   :  { %v3056_v22 = vpop.permute.xlu0 %205 }
  0x9f   :  { %v3058_v23 = vpop.permute.xlu1 %220 }
  0xa0   :  { %v3060_v24 = vpop.permute.xlu0 %215 }
  0xa3   :  { %v3062_v25 = vpop.permute.xlu1 %230 }
  0xa4   :  { %v3064_v26 = vpop.permute.xlu0 %225 }
  0xa7   :  { %v3066_v27 = vpop.permute.xlu1 %240 }
  0xa8   :  { %v3068_v28 = vpop.permute.xlu0 %235 }
  0xab   :  { %v3070_v29 = vpop.permute.xlu1 %250 }
  0xac   :  { %v3072_v30 = vpop.permute.xlu0 %245 }
  0xaf   :  { %v3074_v31 = vpop.permute.xlu1 %260 }
  0xb0   :  { %v3076_v32 = vpop.permute.xlu0 %255 }
  0xb3   :  { %v3078_v33 = vpop.permute.xlu1 %270 }
  0xb4   :  { %v3080_v34 = vpop.permute.xlu0 %265 }
  0xb7   :  { %v3082_v35 = vpop.permute.xlu1 %280 }
  0xb8   :  { %v3084_v38 = vpop.permute.xlu0 %275 }
  0xbb   :  { %v3086_v43 = vpop.permute.xlu1 %290 }
  0xbc   :  { %v3088_v56 = vpop.permute.xlu0 %285 }
  0xbf   :  { %v3092_v5 = vpop.permute.xlu1 %300 }
  0xde   :  { %v2244_v36 = vpop.f32.mrb[0].mxu0 }
  0xdf   :  { %v2346_v37 = vpop.f32.mrb[0].mxu1  ;;  %v735_v39 = vadd.f32 %v2244_v36, %v151_v12  ;;  %v729_v41 = vpop.f32.mrb[1].mxu0 }
  0xe0   :  { %v1383_v40 = vadd.f32 %v2346_v37, %v151_v12  ;;  %v1377_v42 = vpop.f32.mrb[1].mxu1  ;;  %v730_v46 = vadd.f32 %v729_v41, %v146_v10 }
  0xe1   :  { %vm1049_vm2 = vcmp.gt.f32.partialorder %v735_v39, 0.0  ;;  %v1113_v44 = vmul.f32 0.2, %v735_v39  ;;  %v1378_v47 = vadd.f32 %v1377_v42, %v146_v10 }
  0xe2   :  { %vm1697_vm3 = vcmp.gt.f32.partialorder %v1383_v40, 0.0  ;;  %v1761_v45 = vmul.f32 0.2, %v1383_v40  ;;  %v2247_v48 = vpop.f32.mrb[2].mxu0  ;;  %vm1048_vm4 = vcmp.gt.f32.partialorder %v730_v46, 0.0 }
  0xe3   :  { %v2349_v49 = vpop.f32.mrb[2].mxu1  ;;  %v1177_v50 = vsel %vm1049_vm2, %v735_v39, %v1113_v44  ;;  %v745_v52 = vadd.f32 %v2247_v48, %v161_v11  ;;  %v1112_v54 = vmul.f32 0.2, %v730_v46  ;;  %vm1696_vm5 = vcmp.gt.f32.partialorder %v1378_v47, 0.0  ;;  %v739_v61 = vpop.f32.mrb[3].mxu0 }
  0xe4   :  { %v1825_v51 = vsel %vm1697_vm3, %v1383_v40, %v1761_v45  ;;  %v1393_v53 = vadd.f32 %v2349_v49, %v161_v11  ;;  %1241 = vst [vmem:[#allocation2 + $0x8] sm:$0xff] %v1177_v50  ;;  %v1760_v55 = vmul.f32 0.2, %v1378_v47  ;;  %v1387_v62 = vpop.f32.mrb[3].mxu1  ;;  %v740_v1 = vadd.f32 %v739_v61, %v3036_v9  ;;  %v3102_v49 = vpop.permute.xlu1 %310 }
  0xe5   :  { %1890 = vst [vmem:[#allocation2 + $0x208] sm:$0xff] %v1825_v51  ;;  %vm1051_vm6 = vcmp.gt.f32.partialorder %v745_v52, 0.0  ;;  %v1115_v57 = vmul.f32 0.2, %v745_v52  ;;  %v1176_v59 = vsel %vm1048_vm4, %v730_v46, %v1112_v54  ;;  %v1388_v2 = vadd.f32 %v1387_v62, %v3036_v9  ;;  %v3098_v46 = vpop.permute.xlu0 %295 }
  0xe6   :  { %vm1699_vm7 = vcmp.gt.f32.partialorder %v1393_v53, 0.0  ;;  %v1763_v58 = vmul.f32 0.2, %v1393_v53  ;;  %v1824_v60 = vsel %vm1696_vm5, %v1378_v47, %v1760_v55  ;;  %1240 = vst [vmem:[#allocation2] sm:$0xff] %v1176_v59  ;;  %v2250_v3 = vpop.f32.mrb[4].mxu0  ;;  %vm1050_vm8 = vcmp.gt.f32.partialorder %v740_v1, 0.0 }
  0xe7   :  { %1889 = vst [vmem:[#allocation2 + $0x200] sm:$0xff] %v1824_v60  ;;  %v1179_v63 = vsel %vm1051_vm6, %v745_v52, %v1115_v57  ;;  %v2352_v4 = vpop.f32.mrb[4].mxu1  ;;  %v755_v6 = vadd.f32 %v2250_v3, %v3038_v13  ;;  %v1114_v8 = vmul.f32 0.2, %v740_v1  ;;  %vm1698_vm9 = vcmp.gt.f32.partialorder %v1388_v2, 0.0  ;;  %v749_v37 = vpop.f32.mrb[5].mxu0 }
  0xe8   :  { %v1827_v0 = vsel %vm1699_vm7, %v1393_v53, %v1763_v58  ;;  %1243 = vst [vmem:[#allocation2 + $0x18] sm:$0xff] %v1179_v63  ;;  %v1403_v7 = vadd.f32 %v2352_v4, %v3038_v13  ;;  %v1762_v10 = vmul.f32 0.2, %v1388_v2  ;;  %v1397_v39 = vpop.f32.mrb[5].mxu1  ;;  %v750_v42 = vadd.f32 %v749_v37, %v3040_v14  ;;  %v3110_v4 = vpop.permute.xlu1 %320 }
  0xe9   :  { %1892 = vst [vmem:[#allocation2 + $0x218] sm:$0xff] %v1827_v0  ;;  %vm1053_vm10 = vcmp.gt.f32.partialorder %v755_v6, 0.0  ;;  %v1117_v11 = vmul.f32 0.2, %v755_v6  ;;  %v1178_v36 = vsel %vm1050_vm8, %v740_v1, %v1114_v8  ;;  %v1398_v13 = vadd.f32 %v1397_v39, %v3040_v14  ;;  %v3108_v1 = vpop.permute.xlu0 %305 }
  0xea   :  { %vm1701_vm11 = vcmp.gt.f32.partialorder %v1403_v7, 0.0  ;;  %v1765_v12 = vmul.f32 0.2, %v1403_v7  ;;  %v1826_v9 = vsel %vm1698_vm9, %v1388_v2, %v1762_v10  ;;  %1242 = vst [vmem:[#allocation2 + $0x10] sm:$0xff] %v1178_v36  ;;  %v2253_v44 = vpop.f32.mrb[6].mxu0  ;;  %vm1052_vm12 = vcmp.gt.f32.partialorder %v750_v42, 0.0 }
  0xeb   :  { %1891 = vst [vmem:[#allocation2 + $0x210] sm:$0xff] %v1826_v9  ;;  %v1181_v40 = vsel %vm1053_vm10, %v755_v6, %v1117_v11  ;;  %v2355_v45 = vpop.f32.mrb[6].mxu1  ;;  %v765_v47 = vadd.f32 %v2253_v44, %v3042_v15  ;;  %v1116_v50 = vmul.f32 0.2, %v750_v42  ;;  %vm1700_vm13 = vcmp.gt.f32.partialorder %v1398_v13, 0.0  ;;  %v759_v55 = vpop.f32.mrb[7].mxu0 }
  0xec   :  { %v1829_v41 = vsel %vm1701_vm11, %v1403_v7, %v1765_v12  ;;  %1245 = vst [vmem:[#allocation2 + $0x28] sm:$0xff] %v1181_v40  ;;  %v1413_v48 = vadd.f32 %v2355_v45, %v3042_v15  ;;  %v1764_v51 = vmul.f32 0.2, %v1398_v13  ;;  %v1407_v57 = vpop.f32.mrb[7].mxu1  ;;  %v760_v15 = vadd.f32 %v759_v55, %v3044_v16 }
  0xed   :  { %1894 = vst [vmem:[#allocation2 + $0x228] sm:$0xff] %v1829_v41  ;;  %vm1055_vm14 = vcmp.gt.f32.partialorder %v765_v47, 0.0  ;;  %v1119_v52 = vmul.f32 0.2, %v765_v47  ;;  %v1180_v53 = vsel %vm1052_vm12, %v750_v42, %v1116_v50  ;;  %v1408_v60 = vadd.f32 %v1407_v57, %v3044_v16  ;;  %v3116_v44 = vpop.permute.xlu0 %315  ;;  %v3120_v57 = vpop.permute.xlu1 %330 }
  0xee   :  { %vm1703_vm15 = vcmp.gt.f32.partialorder %v1413_v48, 0.0  ;;  %v1767_v14 = vmul.f32 0.2, %v1413_v48  ;;  %v1828_v54 = vsel %vm1700_vm13, %v1398_v13, %v1764_v51  ;;  %1244 = vst [vmem:[#allocation2 + $0x20] sm:$0xff] %v1180_v53  ;;  %v2256_v61 = vpop.f32.mrb[8].mxu0  ;;  %vm1054_vm0 = vcmp.gt.f32.partialorder %v760_v15, 0.0 }
  0xef   :  { %1893 = vst [vmem:[#allocation2 + $0x220] sm:$0xff] %v1828_v54  ;;  %v1183_v58 = vsel %vm1055_vm14, %v765_v47, %v1119_v52  ;;  %v2358_v62 = vpop.f32.mrb[8].mxu1  ;;  %v775_v63 = vadd.f32 %v2256_v61, %v3046_v17  ;;  %v1118_v2 = vmul.f32 0.2, %v760_v15  ;;  %vm1702_vm1 = vcmp.gt.f32.partialorder %v1408_v60, 0.0  ;;  %v769_v10 = vpop.f32.mrb[9].mxu0 }
  0xf0   :  { %v1831_v59 = vsel %vm1703_vm15, %v1413_v48, %v1767_v14  ;;  %1247 = vst [vmem:[#allocation2 + $0x38] sm:$0xff] %v1183_v58  ;;  %v1423_v0 = vadd.f32 %v2358_v62, %v3046_v17  ;;  %v1766_v3 = vmul.f32 0.2, %v1408_v60  ;;  %v1417_v11 = vpop.f32.mrb[9].mxu1  ;;  %v770_v36 = vadd.f32 %v769_v10, %v3048_v18 }
  0xf1   :  { %1896 = vst [vmem:[#allocation2 + $0x238] sm:$0xff] %v1831_v59  ;;  %vm1057_vm2 = vcmp.gt.f32.partialorder %v775_v63, 0.0  ;;  %v1121_v6 = vmul.f32 0.2, %v775_v63  ;;  %v1182_v7 = vsel %vm1054_vm0, %v760_v15, %v1118_v2  ;;  %v1418_v9 = vadd.f32 %v1417_v11, %v3048_v18  ;;  %v3126_v10 = vpop.permute.xlu0 %325 }
  0xf2   :  { %vm1705_vm3 = vcmp.gt.f32.partialorder %v1423_v0, 0.0  ;;  %v1769_v16 = vmul.f32 0.2, %v1423_v0  ;;  %v1830_v8 = vsel %vm1702_vm1, %v1408_v60, %v1766_v3  ;;  %1246 = vst [vmem:[#allocation2 + $0x30] sm:$0xff] %v1182_v7  ;;  %v2259_v37 = vpop.f32.mrb[10].mxu0  ;;  %vm1056_vm4 = vcmp.gt.f32.partialorder %v770_v36, 0.0 }
  0xf3   :  { %1895 = vst [vmem:[#allocation2 + $0x230] sm:$0xff] %v1830_v8  ;;  %v1185_v12 = vsel %vm1057_vm2, %v775_v63, %v1121_v6  ;;  %v2361_v39 = vpop.f32.mrb[10].mxu1  ;;  %v785_v40 = vadd.f32 %v2259_v37, %v3050_v19  ;;  %v1120_v42 = vmul.f32 0.2, %v770_v36  ;;  %vm1704_vm5 = vcmp.gt.f32.partialorder %v1418_v9, 0.0  ;;  %v779_v50 = vpop.f32.mrb[11].mxu0 }
  0xf4   :  { %v1833_v17 = vsel %vm1705_vm3, %v1423_v0, %v1769_v16  ;;  %1249 = vst [vmem:[#allocation2 + $0x48] sm:$0xff] %v1185_v12  ;;  %v1433_v41 = vadd.f32 %v2361_v39, %v3050_v19  ;;  %v1768_v13 = vmul.f32 0.2, %v1418_v9  ;;  %v1427_v51 = vpop.f32.mrb[11].mxu1  ;;  %v780_v19 = vadd.f32 %v779_v50, %v3052_v20 }
  0xf5   :  { %1898 = vst [vmem:[#allocation2 + $0x248] sm:$0xff] %v1833_v17  ;;  %vm1059_vm6 = vcmp.gt.f32.partialorder %v785_v40, 0.0  ;;  %v1123_v45 = vmul.f32 0.2, %v785_v40  ;;  %v1184_v48 = vsel %vm1056_vm4, %v770_v36, %v1120_v42  ;;  %v1428_v53 = vadd.f32 %v1427_v51, %v3052_v20  ;;  %v3130_v17 = vpop.permute.xlu1 %340 }
  0xf6   :  { %vm1707_vm7 = vcmp.gt.f32.partialorder %v1433_v41, 0.0  ;;  %v1771_v47 = vmul.f32 0.2, %v1433_v41  ;;  %v1832_v18 = vsel %vm1704_vm5, %v1418_v9, %v1768_v13  ;;  %1248 = vst [vmem:[#allocation2 + $0x40] sm:$0xff] %v1184_v48  ;;  %v2262_v54 = vpop.f32.mrb[12].mxu0  ;;  %vm1058_vm8 = vcmp.gt.f32.partialorder %v780_v19, 0.0 }
  0xf7   :  { %1897 = vst [vmem:[#allocation2 + $0x240] sm:$0xff] %v1832_v18  ;;  %v1187_v52 = vsel %vm1059_vm6, %v785_v40, %v1123_v45  ;;  %v2364_v55 = vpop.f32.mrb[12].mxu1  ;;  %v795_v58 = vadd.f32 %v2262_v54, %v3054_v21  ;;  %v1122_v15 = vmul.f32 0.2, %v780_v19  ;;  %vm1706_vm9 = vcmp.gt.f32.partialorder %v1428_v53, 0.0  ;;  %v789_v0 = vpop.f32.mrb[13].mxu0 }
  0xf8   :  { %v1835_v14 = vsel %vm1707_vm7, %v1433_v41, %v1771_v47  ;;  %1251 = vst [vmem:[#allocation2 + $0x58] sm:$0xff] %v1187_v52  ;;  %v1443_v59 = vadd.f32 %v2364_v55, %v3054_v21  ;;  %v1770_v60 = vmul.f32 0.2, %v1428_v53  ;;  %v1437_v2 = vpop.f32.mrb[13].mxu1  ;;  %v790_v16 = vadd.f32 %v789_v0, %v3056_v22  ;;  %v3136_v52 = vpop.permute.xlu0 %335 }
  0xf9   :  { %1900 = vst [vmem:[#allocation2 + $0x258] sm:$0xff] %v1835_v14  ;;  %vm1061_vm10 = vcmp.gt.f32.partialorder %v795_v58, 0.0  ;;  %v1125_v61 = vmul.f32 0.2, %v795_v58  ;;  %v1186_v63 = vsel %vm1058_vm8, %v780_v19, %v1122_v15  ;;  %v1438_v21 = vadd.f32 %v1437_v2, %v3056_v22 }
  0xfa   :  { %vm1709_vm11 = vcmp.gt.f32.partialorder %v1443_v59, 0.0  ;;  %v1773_v62 = vmul.f32 0.2, %v1443_v59  ;;  %v1834_v20 = vsel %vm1706_vm9, %v1428_v53, %v1770_v60  ;;  %1250 = vst [vmem:[#allocation2 + $0x50] sm:$0xff] %v1186_v63  ;;  %v2265_v7 = vpop.f32.mrb[14].mxu0  ;;  %vm1060_vm12 = vcmp.gt.f32.partialorder %v790_v16, 0.0  ;;  %v3138_v53 = vpop.permute.xlu1 %350 }
  0xfb   :  { %1899 = vst [vmem:[#allocation2 + $0x250] sm:$0xff] %v1834_v20  ;;  %v1189_v3 = vsel %vm1061_vm10, %v795_v58, %v1125_v61  ;;  %v2367_v8 = vpop.f32.mrb[14].mxu1  ;;  %v805_v11 = vadd.f32 %v2265_v7, %v3058_v23  ;;  %v1124_v36 = vmul.f32 0.2, %v790_v16  ;;  %vm1708_vm13 = vcmp.gt.f32.partialorder %v1438_v21, 0.0  ;;  %v799_v41 = vpop.f32.mrb[15].mxu0 }
  0xfc   :  { %v1837_v6 = vsel %vm1709_vm11, %v1443_v59, %v1773_v62  ;;  %1253 = vst [vmem:[#allocation2 + $0x68] sm:$0xff] %v1189_v3  ;;  %v1453_v12 = vadd.f32 %v2367_v8, %v3058_v23  ;;  %v1772_v9 = vmul.f32 0.2, %v1438_v21  ;;  %v1447_v42 = vpop.f32.mrb[15].mxu1  ;;  %v800_v23 = vadd.f32 %v799_v41, %v3060_v24  ;;  %v3144_v7 = vpop.permute.xlu0 %345 }
  0xfd   :  { %1902 = vst [vmem:[#allocation2 + $0x268] sm:$0xff] %v1837_v6  ;;  %vm1063_vm14 = vcmp.gt.f32.partialorder %v805_v11, 0.0  ;;  %v1127_v37 = vmul.f32 0.2, %v805_v11  ;;  %v1188_v39 = vsel %vm1060_vm12, %v790_v16, %v1124_v36  ;;  %v1448_v47 = vadd.f32 %v1447_v42, %v3060_v24 }
  0xfe   :  { %vm1711_vm15 = vcmp.gt.f32.partialorder %v1453_v12, 0.0  ;;  %v1775_v22 = vmul.f32 0.2, %v1453_v12  ;;  %v1836_v40 = vsel %vm1708_vm13, %v1438_v21, %v1772_v9  ;;  %1252 = vst [vmem:[#allocation2 + $0x60] sm:$0xff] %v1188_v39  ;;  %v2268_v48 = vpop.f32.mrb[16].mxu0  ;;  %vm1062_vm0 = vcmp.gt.f32.partialorder %v800_v23, 0.0 }
  0xff   :  { %1901 = vst [vmem:[#allocation2 + $0x260] sm:$0xff] %v1836_v40  ;;  %v1191_v13 = vsel %vm1063_vm14, %v805_v11, %v1127_v37  ;;  %v2370_v18 = vpop.f32.mrb[16].mxu1  ;;  %v815_v50 = vadd.f32 %v2268_v48, %v3062_v25  ;;  %v1126_v14 = vmul.f32 0.2, %v800_v23  ;;  %vm1710_vm1 = vcmp.gt.f32.partialorder %v1448_v47, 0.0  ;;  %v809_v59 = vpop.f32.mrb[17].mxu0 }
 0x100   :  { %v1839_v45 = vsel %vm1711_vm15, %v1453_v12, %v1775_v22  ;;  %1255 = vst [vmem:[#allocation2 + $0x78] sm:$0xff] %v1191_v13  ;;  %v1463_v51 = vadd.f32 %v2370_v18, %v3062_v25  ;;  %v1774_v19 = vmul.f32 0.2, %v1448_v47  ;;  %v1457_v15 = vpop.f32.mrb[17].mxu1  ;;  %v810_v61 = vadd.f32 %v809_v59, %v3064_v26 }
 0x101   :  { %1904 = vst [vmem:[#allocation2 + $0x278] sm:$0xff] %v1839_v45  ;;  %vm1065_vm2 = vcmp.gt.f32.partialorder %v815_v50, 0.0  ;;  %v1129_v54 = vmul.f32 0.2, %v815_v50  ;;  %v1190_v55 = vsel %vm1062_vm0, %v800_v23, %v1126_v14  ;;  %v1458_v62 = vadd.f32 %v1457_v15, %v3064_v26 }
 0x102   :  { %vm1713_vm3 = vcmp.gt.f32.partialorder %v1463_v51, 0.0  ;;  %v1777_v24 = vmul.f32 0.2, %v1463_v51  ;;  %v1838_v58 = vsel %vm1710_vm1, %v1448_v47, %v1774_v19  ;;  %1254 = vst [vmem:[#allocation2 + $0x70] sm:$0xff] %v1190_v55  ;;  %v2271_v63 = vpop.f32.mrb[18].mxu0  ;;  %vm1064_vm4 = vcmp.gt.f32.partialorder %v810_v61, 0.0  ;;  %v3150_v47 = vpop.permute.xlu1 %360 }
 0x103   :  { %1903 = vst [vmem:[#allocation2 + $0x270] sm:$0xff] %v1838_v58  ;;  %v1193_v60 = vsel %vm1065_vm2, %v815_v50, %v1129_v54  ;;  %v2373_v20 = vpop.f32.mrb[18].mxu1  ;;  %v825_v0 = vadd.f32 %v2271_v63, %v3066_v27  ;;  %v819_v3 = vpop.f32.mrb[19].mxu0  ;;  %v1128_v16 = vmul.f32 0.2, %v810_v61  ;;  %vm1712_vm5 = vcmp.gt.f32.partialorder %v1458_v62, 0.0 }
 0x104   :  { %v1841_v25 = vsel %vm1713_vm3, %v1463_v51, %v1777_v24  ;;  %1257 = vst [vmem:[#allocation2 + $0x88] sm:$0xff] %v1193_v60  ;;  %v1473_v2 = vadd.f32 %v2373_v20, %v3066_v27  ;;  %v1467_v6 = vpop.f32.mrb[19].mxu1  ;;  %v1776_v21 = vmul.f32 0.2, %v1458_v62  ;;  %v820_v36 = vadd.f32 %v819_v3, %v3068_v28 }
 0x105   :  { %1906 = vst [vmem:[#allocation2 + $0x288] sm:$0xff] %v1841_v25  ;;  %vm1067_vm6 = vcmp.gt.f32.partialorder %v825_v0, 0.0  ;;  %v1131_v8 = vmul.f32 0.2, %v825_v0  ;;  %v1192_v11 = vsel %vm1064_vm4, %v810_v61, %v1128_v16  ;;  %v1468_v9 = vadd.f32 %v1467_v6, %v3068_v28  ;;  %v3156_v61 = vpop.permute.xlu0 %355 }
 0x106   :  { %vm1715_vm7 = vcmp.gt.f32.partialorder %v1473_v2, 0.0  ;;  %v1779_v26 = vmul.f32 0.2, %v1473_v2  ;;  %v1840_v12 = vsel %vm1712_vm5, %v1458_v62, %v1776_v21  ;;  %v2274_v37 = vpop.f32.mrb[20].mxu0  ;;  %1256 = vst [vmem:[#allocation2 + $0x80] sm:$0xff] %v1192_v11  ;;  %vm1066_vm8 = vcmp.gt.f32.partialorder %v820_v36, 0.0 }
 0x107   :  { %v2376_v27 = vpop.f32.mrb[20].mxu1  ;;  %1905 = vst [vmem:[#allocation2 + $0x280] sm:$0xff] %v1840_v12  ;;  %v1195_v22 = vsel %vm1067_vm6, %v825_v0, %v1131_v8  ;;  %v835_v40 = vadd.f32 %v2274_v37, %v3070_v29  ;;  %v829_v42 = vpop.f32.mrb[21].mxu0  ;;  %v1130_v45 = vmul.f32 0.2, %v820_v36  ;;  %vm1714_vm9 = vcmp.gt.f32.partialorder %v1468_v9, 0.0 }
 0x108   :  { %v1843_v39 = vsel %vm1715_vm7, %v1473_v2, %v1779_v26  ;;  %v1483_v41 = vadd.f32 %v2376_v27, %v3070_v29  ;;  %v1477_v13 = vpop.f32.mrb[21].mxu1  ;;  %1259 = vst [vmem:[#allocation2 + $0x98] sm:$0xff] %v1195_v22  ;;  %v1778_v23 = vmul.f32 0.2, %v1468_v9  ;;  %v830_v51 = vadd.f32 %v829_v42, %v3072_v30 }
 0x109   :  { %1908 = vst [vmem:[#allocation2 + $0x298] sm:$0xff] %v1843_v39  ;;  %vm1069_vm10 = vcmp.gt.f32.partialorder %v835_v40, 0.0  ;;  %v1133_v28 = vmul.f32 0.2, %v835_v40  ;;  %v1194_v18 = vsel %vm1066_vm8, %v820_v36, %v1130_v45  ;;  %v1478_v29 = vadd.f32 %v1477_v13, %v3072_v30 }
 0x10a   :  { %vm1717_vm11 = vcmp.gt.f32.partialorder %v1483_v41, 0.0  ;;  %v1781_v48 = vmul.f32 0.2, %v1483_v41  ;;  %v1842_v50 = vsel %vm1714_vm9, %v1468_v9, %v1778_v23  ;;  %v2277_v14 = vpop.f32.mrb[22].mxu0  ;;  %1258 = vst [vmem:[#allocation2 + $0x90] sm:$0xff] %v1194_v18  ;;  %vm1068_vm12 = vcmp.gt.f32.partialorder %v830_v51, 0.0  ;;  %v3162_v9 = vpop.permute.xlu1 %370 }
 0x10b   :  { %v2379_v19 = vpop.f32.mrb[22].mxu1  ;;  %1907 = vst [vmem:[#allocation2 + $0x290] sm:$0xff] %v1842_v50  ;;  %v1197_v54 = vsel %vm1069_vm10, %v835_v40, %v1133_v28  ;;  %v845_v55 = vadd.f32 %v2277_v14, %v3074_v31  ;;  %v839_v59 = vpop.f32.mrb[23].mxu0  ;;  %v1132_v60 = vmul.f32 0.2, %v830_v51  ;;  %vm1716_vm13 = vcmp.gt.f32.partialorder %v1478_v29, 0.0 }
 0x10c   :  { %v1845_v24 = vsel %vm1717_vm11, %v1483_v41, %v1781_v48  ;;  %v1493_v58 = vadd.f32 %v2379_v19, %v3074_v31  ;;  %v1487_v15 = vpop.f32.mrb[23].mxu1  ;;  %1261 = vst [vmem:[#allocation2 + $0xa8] sm:$0xff] %v1197_v54  ;;  %v1780_v25 = vmul.f32 0.2, %v1478_v29  ;;  %v840_v0 = vadd.f32 %v839_v59, %v3076_v32 }
 0x10d   :  { %1910 = vst [vmem:[#allocation2 + $0x2a8] sm:$0xff] %v1845_v24  ;;  %vm1071_vm14 = vcmp.gt.f32.partialorder %v845_v55, 0.0  ;;  %v1135_v30 = vmul.f32 0.2, %v845_v55  ;;  %v1196_v63 = vsel %vm1068_vm12, %v830_v51, %v1132_v60  ;;  %v1488_v31 = vadd.f32 %v1487_v15, %v3076_v32  ;;  %v3168_v51 = vpop.permute.xlu0 %365 }
 0x10e   :  { %vm1719_vm15 = vcmp.gt.f32.partialorder %v1493_v58, 0.0  ;;  %v1783_v62 = vmul.f32 0.2, %v1493_v58  ;;  %v1844_v20 = vsel %vm1716_vm13, %v1478_v29, %v1780_v25  ;;  %v2280_v2 = vpop.f32.mrb[24].mxu0  ;;  %1260 = vst [vmem:[#allocation2 + $0xa0] sm:$0xff] %v1196_v63  ;;  %vm1070_vm0 = vcmp.gt.f32.partialorder %v840_v0, 0.0 }
 0x10f   :  { %v2382_v3 = vpop.f32.mrb[24].mxu1  ;;  %1909 = vst [vmem:[#allocation2 + $0x2a0] sm:$0xff] %v1844_v20  ;;  %v1199_v6 = vsel %vm1071_vm14, %v845_v55, %v1135_v30  ;;  %v855_v21 = vadd.f32 %v2280_v2, %v3078_v33  ;;  %v849_v26 = vpop.f32.mrb[25].mxu0  ;;  %v1134_v12 = vmul.f32 0.2, %v840_v0  ;;  %vm1718_vm1 = vcmp.gt.f32.partialorder %v1488_v31, 0.0 }
 0x110   :  { %v1847_v16 = vsel %vm1719_vm15, %v1493_v58, %v1783_v62  ;;  %v1503_v8 = vadd.f32 %v2382_v3, %v3078_v33  ;;  %v1497_v11 = vpop.f32.mrb[25].mxu1  ;;  %1263 = vst [vmem:[#allocation2 + $0xb8] sm:$0xff] %v1199_v6  ;;  %v1782_v36 = vmul.f32 0.2, %v1488_v31  ;;  %v850_v39 = vadd.f32 %v849_v26, %v3080_v34  ;;  %v3174_v20 = vpop.permute.xlu1 %380 }
 0x111   :  { %1912 = vst [vmem:[#allocation2 + $0x2b8] sm:$0xff] %v1847_v16  ;;  %vm1073_vm2 = vcmp.gt.f32.partialorder %v855_v21, 0.0  ;;  %v1137_v32 = vmul.f32 0.2, %v855_v21  ;;  %v1198_v27 = vsel %vm1070_vm0, %v840_v0, %v1134_v12  ;;  %v1498_v33 = vadd.f32 %v1497_v11, %v3080_v34 }
 0x112   :  { %vm1721_vm3 = vcmp.gt.f32.partialorder %v1503_v8, 0.0  ;;  %v1785_v37 = vmul.f32 0.2, %v1503_v8  ;;  %v1846_v22 = vsel %vm1718_vm1, %v1488_v31, %v1782_v36  ;;  %v2283_v40 = vpop.f32.mrb[26].mxu0  ;;  %1262 = vst [vmem:[#allocation2 + $0xb0] sm:$0xff] %v1198_v27  ;;  %vm1072_vm4 = vcmp.gt.f32.partialorder %v850_v39, 0.0  ;;  %v3180_v27 = vpop.permute.xlu0 %375 }
 0x113   :  { %v2385_v41 = vpop.f32.mrb[26].mxu1  ;;  %1911 = vst [vmem:[#allocation2 + $0x2b0] sm:$0xff] %v1846_v22  ;;  %v1201_v42 = vsel %vm1073_vm2, %v855_v21, %v1137_v32  ;;  %v865_v45 = vadd.f32 %v2283_v40, %v3082_v35  ;;  %v859_v28 = vpop.f32.mrb[27].mxu0  ;;  %v1136_v18 = vmul.f32 0.2, %v850_v39  ;;  %vm1720_vm5 = vcmp.gt.f32.partialorder %v1498_v33, 0.0 }
 0x114   :  { %v1849_v13 = vsel %vm1721_vm3, %v1503_v8, %v1785_v37  ;;  %v1513_v23 = vadd.f32 %v2385_v41, %v3082_v35  ;;  %v1507_v48 = vpop.f32.mrb[27].mxu1  ;;  %1265 = vst [vmem:[#allocation2 + $0xc8] sm:$0xff] %v1201_v42  ;;  %v1784_v50 = vmul.f32 0.2, %v1498_v33  ;;  %v860_v54 = vadd.f32 %v859_v28, %v3084_v38 }
 0x115   :  { %1914 = vst [vmem:[#allocation2 + $0x2c8] sm:$0xff] %v1849_v13  ;;  %vm1075_vm6 = vcmp.gt.f32.partialorder %v865_v45, 0.0  ;;  %v1139_v34 = vmul.f32 0.2, %v865_v45  ;;  %v1200_v14 = vsel %vm1072_vm4, %v850_v39, %v1136_v18  ;;  %v1508_v35 = vadd.f32 %v1507_v48, %v3084_v38 }
 0x116   :  { %vm1723_vm7 = vcmp.gt.f32.partialorder %v1513_v23, 0.0  ;;  %v1787_v29 = vmul.f32 0.2, %v1513_v23  ;;  %v1848_v19 = vsel %vm1720_vm5, %v1498_v33, %v1784_v50  ;;  %v2286_v24 = vpop.f32.mrb[28].mxu0  ;;  %1264 = vst [vmem:[#allocation2 + $0xc0] sm:$0xff] %v1200_v14  ;;  %vm1074_vm8 = vcmp.gt.f32.partialorder %v860_v54, 0.0 }
 0x117   :  { %v2388_v55 = vpop.f32.mrb[28].mxu1  ;;  %1913 = vst [vmem:[#allocation2 + $0x2c0] sm:$0xff] %v1848_v19  ;;  %v1203_v58 = vsel %vm1075_vm6, %v865_v45, %v1139_v34  ;;  %v875_v15 = vadd.f32 %v2286_v24, %v3086_v43  ;;  %v869_v25 = vpop.f32.mrb[29].mxu0  ;;  %v1138_v62 = vmul.f32 0.2, %v860_v54  ;;  %vm1722_vm9 = vcmp.gt.f32.partialorder %v1508_v35, 0.0 }
 0x118   :  { %v1851_v59 = vsel %vm1723_vm7, %v1513_v23, %v1787_v29  ;;  %v1523_v60 = vadd.f32 %v2388_v55, %v3086_v43  ;;  %v1517_v30 = vpop.f32.mrb[29].mxu1  ;;  %1267 = vst [vmem:[#allocation2 + $0xd8] sm:$0xff] %v1203_v58  ;;  %v1786_v63 = vmul.f32 0.2, %v1508_v35  ;;  %v870_v3 = vadd.f32 %v869_v25, %v3088_v56  ;;  %v3186_v29 = vpop.permute.xlu1 %390 }
 0x119   :  { %1916 = vst [vmem:[#allocation2 + $0x2d8] sm:$0xff] %v1851_v59  ;;  %vm1077_vm10 = vcmp.gt.f32.partialorder %v875_v15, 0.0  ;;  %v1141_v38 = vmul.f32 0.2, %v875_v15  ;;  %v1202_v31 = vsel %vm1074_vm8, %v860_v54, %v1138_v62  ;;  %v1518_v43 = vadd.f32 %v1517_v30, %v3088_v56 }
 0x11a   :  { %vm1725_vm11 = vcmp.gt.f32.partialorder %v1523_v60, 0.0  ;;  %v1789_v0 = vmul.f32 0.2, %v1523_v60  ;;  %v1850_v2 = vsel %vm1722_vm9, %v1508_v35, %v1786_v63  ;;  %v2289_v6 = vpop.f32.mrb[30].mxu0  ;;  %1266 = vst [vmem:[#allocation2 + $0xd0] sm:$0xff] %v1202_v31  ;;  %vm1076_vm12 = vcmp.gt.f32.partialorder %v870_v3, 0.0 }
 0x11b   :  { %v2391_v16 = vpop.f32.mrb[30].mxu1  ;;  %1915 = vst [vmem:[#allocation2 + $0x2d0] sm:$0xff] %v1850_v2  ;;  %v1205_v21 = vsel %vm1077_vm10, %v875_v15, %v1141_v38  ;;  %v885_v26 = vadd.f32 %v2289_v6, %v3092_v5  ;;  %v879_v12 = vpop.f32.mrb[31].mxu0  ;;  %v1140_v32 = vmul.f32 0.2, %v870_v3  ;;  %vm1724_vm13 = vcmp.gt.f32.partialorder %v1518_v43, 0.0 }
 0x11c   :  { %v1853_v8 = vsel %vm1725_vm11, %v1523_v60, %v1789_v0  ;;  %v1533_v11 = vadd.f32 %v2391_v16, %v3092_v5  ;;  %v1527_v36 = vpop.f32.mrb[31].mxu1  ;;  %1269 = vst [vmem:[#allocation2 + $0xe8] sm:$0xff] %v1205_v21  ;;  %v1788_v37 = vmul.f32 0.2, %v1518_v43  ;;  %v880_v40 = vadd.f32 %v879_v12, %v3098_v46  ;;  %v3192_v38 = vpop.permute.xlu0 %385 }
 0x11d   :  { %1918 = vst [vmem:[#allocation2 + $0x2e8] sm:$0xff] %v1853_v8  ;;  %vm1079_vm14 = vcmp.gt.f32.partialorder %v885_v26, 0.0  ;;  %v1143_v56 = vmul.f32 0.2, %v885_v26  ;;  %v1204_v39 = vsel %vm1076_vm12, %v870_v3, %v1140_v32  ;;  %v1528_v5 = vadd.f32 %v1527_v36, %v3098_v46 }
 0x11e   :  { %vm1727_vm15 = vcmp.gt.f32.partialorder %v1533_v11, 0.0  ;;  %v1791_v22 = vmul.f32 0.2, %v1533_v11  ;;  %v1852_v33 = vsel %vm1724_vm13, %v1518_v43, %v1788_v37  ;;  %v2292_v41 = vpop.f32.mrb[32].mxu0  ;;  %1268 = vst [vmem:[#allocation2 + $0xe0] sm:$0xff] %v1204_v39  ;;  %vm1078_vm0 = vcmp.gt.f32.partialorder %v880_v40, 0.0  ;;  %v3198_v37 = vpop.permute.xlu1 %400 }
 0x11f   :  { %v2394_v42 = vpop.f32.mrb[32].mxu1  ;;  %1917 = vst [vmem:[#allocation2 + $0x2e0] sm:$0xff] %v1852_v33  ;;  %v1207_v13 = vsel %vm1079_vm14, %v885_v26, %v1143_v56  ;;  %v895_v23 = vadd.f32 %v2292_v41, %v3102_v49  ;;  %v889_v48 = vpop.f32.mrb[33].mxu0  ;;  %v1142_v50 = vmul.f32 0.2, %v880_v40  ;;  %vm1726_vm1 = vcmp.gt.f32.partialorder %v1528_v5, 0.0 }
 0x120   :  { %v1855_v45 = vsel %vm1727_vm15, %v1533_v11, %v1791_v22  ;;  %v1543_v28 = vadd.f32 %v2394_v42, %v3102_v49  ;;  %v1537_v18 = vpop.f32.mrb[33].mxu1  ;;  %1271 = vst [vmem:[#allocation2 + $0xf8] sm:$0xff] %v1207_v13  ;;  %v1790_v34 = vmul.f32 0.2, %v1528_v5  ;;  %v890_v35 = vadd.f32 %v889_v48, %v3108_v1 }
 0x121   :  { %1920 = vst [vmem:[#allocation2 + $0x2f8] sm:$0xff] %v1855_v45  ;;  %vm1081_vm2 = vcmp.gt.f32.partialorder %v895_v23, 0.0  ;;  %v1145_v46 = vmul.f32 0.2, %v895_v23  ;;  %v1206_v19 = vsel %vm1078_vm0, %v880_v40, %v1142_v50  ;;  %v1538_v49 = vadd.f32 %v1537_v18, %v3108_v1  ;;  %v3204_v50 = vpop.permute.xlu0 %395 }
 0x122   :  { %vm1729_vm3 = vcmp.gt.f32.partialorder %v1543_v28, 0.0  ;;  %v1793_v14 = vmul.f32 0.2, %v1543_v28  ;;  %v1854_v54 = vsel %vm1726_vm1, %v1528_v5, %v1790_v34  ;;  %v2295_v24 = vpop.f32.mrb[34].mxu0  ;;  %1270 = vst [vmem:[#allocation2 + $0xf0] sm:$0xff] %v1206_v19  ;;  %vm1080_vm4 = vcmp.gt.f32.partialorder %v890_v35, 0.0 }
 0x123   :  { %v2397_v55 = vpop.f32.mrb[34].mxu1  ;;  %1919 = vst [vmem:[#allocation2 + $0x2f0] sm:$0xff] %v1854_v54  ;;  %v1209_v58 = vsel %vm1081_vm2, %v895_v23, %v1145_v46  ;;  %v905_v15 = vadd.f32 %v2295_v24, %v3110_v4  ;;  %v899_v25 = vpop.f32.mrb[35].mxu0  ;;  %v1144_v62 = vmul.f32 0.2, %v890_v35  ;;  %vm1728_vm5 = vcmp.gt.f32.partialorder %v1538_v49, 0.0 }
 0x124   :  { %v1857_v59 = vsel %vm1729_vm3, %v1543_v28, %v1793_v14  ;;  %v1553_v60 = vadd.f32 %v2397_v55, %v3110_v4  ;;  %v1547_v30 = vpop.f32.mrb[35].mxu1  ;;  %1273 = vst [vmem:[#allocation2 + $0x108] sm:$0xff] %v1209_v58  ;;  %v1792_v63 = vmul.f32 0.2, %v1538_v49  ;;  %v900_v3 = vadd.f32 %v899_v25, %v3116_v44 }
 0x125   :  { %1922 = vst [vmem:[#allocation2 + $0x308] sm:$0xff] %v1857_v59  ;;  %vm1083_vm6 = vcmp.gt.f32.partialorder %v905_v15, 0.0  ;;  %v1147_v1 = vmul.f32 0.2, %v905_v15  ;;  %v1208_v31 = vsel %vm1080_vm4, %v890_v35, %v1144_v62  ;;  %v1548_v4 = vadd.f32 %v1547_v30, %v3116_v44  ;;  %v3210_v30 = vpop.permute.xlu1 %410 }
 0x126   :  { %vm1731_vm7 = vcmp.gt.f32.partialorder %v1553_v60, 0.0  ;;  %v1795_v0 = vmul.f32 0.2, %v1553_v60  ;;  %v1856_v2 = vsel %vm1728_vm5, %v1538_v49, %v1792_v63  ;;  %v2298_v43 = vpop.f32.mrb[36].mxu0  ;;  %1272 = vst [vmem:[#allocation2 + $0x100] sm:$0xff] %v1208_v31  ;;  %vm1082_vm8 = vcmp.gt.f32.partialorder %v900_v3, 0.0 }
 0x127   :  { %v2400_v6 = vpop.f32.mrb[36].mxu1  ;;  %1921 = vst [vmem:[#allocation2 + $0x300] sm:$0xff] %v1856_v2  ;;  %v1211_v16 = vsel %vm1083_vm6, %v905_v15, %v1147_v1  ;;  %v915_v8 = vadd.f32 %v2298_v43, %v3120_v57  ;;  %v909_v11 = vpop.f32.mrb[37].mxu0  ;;  %v1146_v36 = vmul.f32 0.2, %v900_v3  ;;  %vm1730_vm9 = vcmp.gt.f32.partialorder %v1548_v4, 0.0 }
 0x128   :  { %v1859_v21 = vsel %vm1731_vm7, %v1553_v60, %v1795_v0  ;;  %v1563_v26 = vadd.f32 %v2400_v6, %v3120_v57  ;;  %v1557_v12 = vpop.f32.mrb[37].mxu1  ;;  %1275 = vst [vmem:[#allocation2 + $0x118] sm:$0xff] %v1211_v16  ;;  %v1794_v32 = vmul.f32 0.2, %v1548_v4  ;;  %v910_v33 = vadd.f32 %v909_v11, %v3126_v10  ;;  %v3216_v11 = vpop.permute.xlu0 %405 }
 0x129   :  { %1924 = vst [vmem:[#allocation2 + $0x318] sm:$0xff] %v1859_v21  ;;  %vm1085_vm10 = vcmp.gt.f32.partialorder %v915_v8, 0.0  ;;  %v1149_v44 = vmul.f32 0.2, %v915_v8  ;;  %v1210_v22 = vsel %vm1082_vm8, %v900_v3, %v1146_v36  ;;  %v1558_v57 = vadd.f32 %v1557_v12, %v3126_v10 }
 0x12a   :  { %vm1733_vm11 = vcmp.gt.f32.partialorder %v1563_v26, 0.0  ;;  %v1797_v56 = vmul.f32 0.2, %v1563_v26  ;;  %v1858_v39 = vsel %vm1730_vm9, %v1548_v4, %v1794_v32  ;;  %v2301_v40 = vpop.f32.mrb[38].mxu0  ;;  %1274 = vst [vmem:[#allocation2 + $0x110] sm:$0xff] %v1210_v22  ;;  %vm1084_vm12 = vcmp.gt.f32.partialorder %v910_v33, 0.0 }
 0x12b   :  { %v2403_v5 = vpop.f32.mrb[38].mxu1  ;;  %1923 = vst [vmem:[#allocation2 + $0x310] sm:$0xff] %v1858_v39  ;;  %v1213_v41 = vsel %vm1085_vm10, %v915_v8, %v1149_v44  ;;  %v925_v13 = vadd.f32 %v2301_v40, %v3130_v17  ;;  %v919_v23 = vpop.f32.mrb[39].mxu0  ;;  %v1148_v48 = vmul.f32 0.2, %v910_v33  ;;  %vm1732_vm13 = vcmp.gt.f32.partialorder %v1558_v57, 0.0 }
 0x12c   :  { %v1861_v42 = vsel %vm1733_vm11, %v1563_v26, %v1797_v56  ;;  %v1573_v45 = vadd.f32 %v2403_v5, %v3130_v17  ;;  %v1567_v28 = vpop.f32.mrb[39].mxu1  ;;  %1277 = vst [vmem:[#allocation2 + $0x128] sm:$0xff] %v1213_v41  ;;  %v1796_v18 = vmul.f32 0.2, %v1558_v57  ;;  %v920_v19 = vadd.f32 %v919_v23, %v3136_v52 }
 0x12d   :  { %1926 = vst [vmem:[#allocation2 + $0x328] sm:$0xff] %v1861_v42  ;;  %vm1087_vm14 = vcmp.gt.f32.partialorder %v925_v13, 0.0  ;;  %v1151_v10 = vmul.f32 0.2, %v925_v13  ;;  %v1212_v46 = vsel %vm1084_vm12, %v910_v33, %v1148_v48  ;;  %v1568_v17 = vadd.f32 %v1567_v28, %v3136_v52 }
 0x12e   :  { %vm1735_vm15 = vcmp.gt.f32.partialorder %v1573_v45, 0.0  ;;  %v1799_v34 = vmul.f32 0.2, %v1573_v45  ;;  %v1860_v14 = vsel %vm1732_vm13, %v1558_v57, %v1796_v18  ;;  %v2304_v54 = vpop.f32.mrb[40].mxu0  ;;  %1276 = vst [vmem:[#allocation2 + $0x120] sm:$0xff] %v1212_v46  ;;  %vm1086_vm0 = vcmp.gt.f32.partialorder %v920_v19, 0.0 }
 0x12f   :  { %v2406_v35 = vpop.f32.mrb[40].mxu1  ;;  %1925 = vst [vmem:[#allocation2 + $0x320] sm:$0xff] %v1860_v14  ;;  %v1215_v49 = vsel %vm1087_vm14, %v925_v13, %v1151_v10  ;;  %v935_v55 = vadd.f32 %v2304_v54, %v3138_v53  ;;  %v929_v59 = vpop.f32.mrb[41].mxu0  ;;  %v1150_v60 = vmul.f32 0.2, %v920_v19  ;;  %vm1734_vm1 = vcmp.gt.f32.partialorder %v1568_v17, 0.0 }
 0x130   :  { %v1863_v24 = vsel %vm1735_vm15, %v1573_v45, %v1799_v34  ;;  %v1583_v58 = vadd.f32 %v2406_v35, %v3138_v53  ;;  %v1577_v15 = vpop.f32.mrb[41].mxu1  ;;  %1279 = vst [vmem:[#allocation2 + $0x138] sm:$0xff] %v1215_v49  ;;  %v1798_v25 = vmul.f32 0.2, %v1568_v17  ;;  %v930_v0 = vadd.f32 %v929_v59, %v3144_v7  ;;  %v3222_v45 = vpop.permute.xlu1 %420 }
 0x131   :  { %1928 = vst [vmem:[#allocation2 + $0x338] sm:$0xff] %v1863_v24  ;;  %vm1089_vm2 = vcmp.gt.f32.partialorder %v935_v55, 0.0  ;;  %v1153_v52 = vmul.f32 0.2, %v935_v55  ;;  %v1214_v63 = vsel %vm1086_vm0, %v920_v19, %v1150_v60  ;;  %v1578_v53 = vadd.f32 %v1577_v15, %v3144_v7 }
 0x132   :  { %vm1737_vm3 = vcmp.gt.f32.partialorder %v1583_v58, 0.0  ;;  %v1801_v62 = vmul.f32 0.2, %v1583_v58  ;;  %v1862_v1 = vsel %vm1734_vm1, %v1568_v17, %v1798_v25  ;;  %v2307_v31 = vpop.f32.mrb[42].mxu0  ;;  %1278 = vst [vmem:[#allocation2 + $0x130] sm:$0xff] %v1214_v63  ;;  %vm1088_vm4 = vcmp.gt.f32.partialorder %v930_v0, 0.0 }
 0x133   :  { %v2409_v2 = vpop.f32.mrb[42].mxu1  ;;  %1927 = vst [vmem:[#allocation2 + $0x330] sm:$0xff] %v1862_v1  ;;  %v1217_v3 = vsel %vm1089_vm2, %v935_v55, %v1153_v52  ;;  %v945_v43 = vadd.f32 %v2307_v31, %v3150_v47  ;;  %v939_v16 = vpop.f32.mrb[43].mxu0  ;;  %v1152_v8 = vmul.f32 0.2, %v930_v0  ;;  %vm1736_vm5 = vcmp.gt.f32.partialorder %v1578_v53, 0.0 }
 0x134   :  { %v1865_v4 = vsel %vm1737_vm3, %v1583_v58, %v1801_v62  ;;  %v1593_v6 = vadd.f32 %v2409_v2, %v3150_v47  ;;  %v1587_v21 = vpop.f32.mrb[43].mxu1  ;;  %1281 = vst [vmem:[#allocation2 + $0x148] sm:$0xff] %v1217_v3  ;;  %v1800_v26 = vmul.f32 0.2, %v1578_v53  ;;  %v940_v44 = vadd.f32 %v939_v16, %v3156_v61  ;;  %v3228_v55 = vpop.permute.xlu0 %415 }
 0x135   :  { %1930 = vst [vmem:[#allocation2 + $0x348] sm:$0xff] %v1865_v4  ;;  %vm1091_vm6 = vcmp.gt.f32.partialorder %v945_v43, 0.0  ;;  %v1155_v7 = vmul.f32 0.2, %v945_v43  ;;  %v1216_v36 = vsel %vm1088_vm4, %v930_v0, %v1152_v8  ;;  %v1588_v47 = vadd.f32 %v1587_v21, %v3156_v61  ;;  %v3234_v4 = vpop.permute.xlu1 %430 }
 0x136   :  { %vm1739_vm7 = vcmp.gt.f32.partialorder %v1593_v6, 0.0  ;;  %v1803_v12 = vmul.f32 0.2, %v1593_v6  ;;  %v1864_v32 = vsel %vm1736_vm5, %v1578_v53, %v1800_v26  ;;  %v2310_v56 = vpop.f32.mrb[44].mxu0  ;;  %1280 = vst [vmem:[#allocation2 + $0x140] sm:$0xff] %v1216_v36  ;;  %vm1090_vm8 = vcmp.gt.f32.partialorder %v940_v44, 0.0 }
 0x137   :  { %v2412_v22 = vpop.f32.mrb[44].mxu1  ;;  %1929 = vst [vmem:[#allocation2 + $0x340] sm:$0xff] %v1864_v32  ;;  %v1219_v39 = vsel %vm1091_vm6, %v945_v43, %v1155_v7  ;;  %v955_v57 = vadd.f32 %v2310_v56, %v3162_v9  ;;  %v949_v5 = vpop.f32.mrb[45].mxu0  ;;  %v1154_v42 = vmul.f32 0.2, %v940_v44  ;;  %vm1738_vm9 = vcmp.gt.f32.partialorder %v1588_v47, 0.0 }
 0x138   :  { %v1867_v33 = vsel %vm1739_vm7, %v1593_v6, %v1803_v12  ;;  %v1603_v40 = vadd.f32 %v2412_v22, %v3162_v9  ;;  %v1597_v41 = vpop.f32.mrb[45].mxu1  ;;  %1283 = vst [vmem:[#allocation2 + $0x158] sm:$0xff] %v1219_v39  ;;  %v1802_v13 = vmul.f32 0.2, %v1588_v47  ;;  %v950_v18 = vadd.f32 %v949_v5, %v3168_v51  ;;  %v3240_v39 = vpop.permute.xlu0 %425 }
 0x139   :  { %1932 = vst [vmem:[#allocation2 + $0x358] sm:$0xff] %v1867_v33  ;;  %vm1093_vm10 = vcmp.gt.f32.partialorder %v955_v57, 0.0  ;;  %v1157_v61 = vmul.f32 0.2, %v955_v57  ;;  %v1218_v28 = vsel %vm1090_vm8, %v940_v44, %v1154_v42  ;;  %v1598_v9 = vadd.f32 %v1597_v41, %v3168_v51 }
 0x13a   :  { %vm1741_vm11 = vcmp.gt.f32.partialorder %v1603_v40, 0.0  ;;  %v1805_v23 = vmul.f32 0.2, %v1603_v40  ;;  %v1866_v48 = vsel %vm1738_vm9, %v1588_v47, %v1802_v13  ;;  %v2313_v10 = vpop.f32.mrb[46].mxu0  ;;  %1282 = vst [vmem:[#allocation2 + $0x150] sm:$0xff] %v1218_v28  ;;  %vm1092_vm12 = vcmp.gt.f32.partialorder %v950_v18, 0.0 }
 0x13b   :  { %v2415_v34 = vpop.f32.mrb[46].mxu1  ;;  %1931 = vst [vmem:[#allocation2 + $0x350] sm:$0xff] %v1866_v48  ;;  %v1221_v46 = vsel %vm1093_vm10, %v955_v57, %v1157_v61  ;;  %v965_v19 = vadd.f32 %v2313_v10, %v3174_v20  ;;  %v959_v54 = vpop.f32.mrb[47].mxu0  ;;  %v1156_v49 = vmul.f32 0.2, %v950_v18  ;;  %vm1740_vm13 = vcmp.gt.f32.partialorder %v1598_v9, 0.0 }
 0x13c   :  { %v1869_v14 = vsel %vm1741_vm11, %v1603_v40, %v1805_v23  ;;  %v1613_v17 = vadd.f32 %v2415_v34, %v3174_v20  ;;  %v1607_v35 = vpop.f32.mrb[47].mxu1  ;;  %1285 = vst [vmem:[#allocation2 + $0x168] sm:$0xff] %v1221_v46  ;;  %v1804_v24 = vmul.f32 0.2, %v1598_v9  ;;  %v960_v60 = vadd.f32 %v959_v54, %v3180_v27  ;;  %v3246_v34 = vpop.permute.xlu1 %440 }
 0x13d   :  { %1934 = vst [vmem:[#allocation2 + $0x368] sm:$0xff] %v1869_v14  ;;  %vm1095_vm14 = vcmp.gt.f32.partialorder %v965_v19, 0.0  ;;  %v1159_v51 = vmul.f32 0.2, %v965_v19  ;;  %v1220_v59 = vsel %vm1092_vm12, %v950_v18, %v1156_v49  ;;  %v1608_v20 = vadd.f32 %v1607_v35, %v3180_v27 }
 0x13e   :  { %vm1743_vm15 = vcmp.gt.f32.partialorder %v1613_v17, 0.0  ;;  %v1807_v58 = vmul.f32 0.2, %v1613_v17  ;;  %v1868_v15 = vsel %vm1740_vm13, %v1598_v9, %v1804_v24  ;;  %v2316_v25 = vpop.f32.mrb[48].mxu0  ;;  %1284 = vst [vmem:[#allocation2 + $0x160] sm:$0xff] %v1220_v59  ;;  %vm1094_vm0 = vcmp.gt.f32.partialorder %v960_v60, 0.0 }
 0x13f   :  { %v2418_v52 = vpop.f32.mrb[48].mxu1  ;;  %1933 = vst [vmem:[#allocation2 + $0x360] sm:$0xff] %v1868_v15  ;;  %v1223_v62 = vsel %vm1095_vm14, %v965_v19, %v1159_v51  ;;  %v975_v1 = vadd.f32 %v2316_v25, %v3186_v29  ;;  %v969_v53 = vpop.f32.mrb[49].mxu0  ;;  %v1158_v2 = vmul.f32 0.2, %v960_v60  ;;  %vm1742_vm1 = vcmp.gt.f32.partialorder %v1608_v20, 0.0 }
 0x140   :  { %v1871_v63 = vsel %vm1743_vm15, %v1613_v17, %v1807_v58  ;;  %v1623_v0 = vadd.f32 %v2418_v52, %v3186_v29  ;;  %v1617_v31 = vpop.f32.mrb[49].mxu1  ;;  %1287 = vst [vmem:[#allocation2 + $0x178] sm:$0xff] %v1223_v62  ;;  %v1806_v3 = vmul.f32 0.2, %v1608_v20  ;;  %v970_v21 = vadd.f32 %v969_v53, %v3192_v38  ;;  %v436_v25 = vpop.permute.xlu0 %435 }
 0x141   :  { %1936 = vst [vmem:[#allocation2 + $0x378] sm:$0xff] %v1871_v63  ;;  %vm1097_vm2 = vcmp.gt.f32.partialorder %v975_v1, 0.0  ;;  %v1161_v27 = vmul.f32 0.2, %v975_v1  ;;  %v1222_v6 = vsel %vm1094_vm0, %v960_v60, %v1158_v2  ;;  %v1618_v29 = vadd.f32 %v1617_v31, %v3192_v38 }
 0x142   :  { %vm1745_vm3 = vcmp.gt.f32.partialorder %v1623_v0, 0.0  ;;  %v1809_v43 = vmul.f32 0.2, %v1623_v0  ;;  %v1870_v16 = vsel %vm1742_vm1, %v1608_v20, %v1806_v3  ;;  %v2319_v8 = vpop.f32.mrb[50].mxu0  ;;  %1286 = vst [vmem:[#allocation2 + $0x170] sm:$0xff] %v1222_v6  ;;  %vm1096_vm4 = vcmp.gt.f32.partialorder %v970_v21, 0.0 }
 0x143   :  { %v2421_v26 = vpop.f32.mrb[50].mxu1  ;;  %1935 = vst [vmem:[#allocation2 + $0x370] sm:$0xff] %v1870_v16  ;;  %v1225_v7 = vsel %vm1097_vm2, %v975_v1, %v1161_v27  ;;  %v985_v36 = vadd.f32 %v2319_v8, %v3198_v37  ;;  %v979_v44 = vpop.f32.mrb[51].mxu0  ;;  %v1160_v56 = vmul.f32 0.2, %v970_v21  ;;  %vm1744_vm5 = vcmp.gt.f32.partialorder %v1618_v29, 0.0 }
 0x144   :  { %v1873_v12 = vsel %vm1745_vm3, %v1623_v0, %v1809_v43  ;;  %v1633_v32 = vadd.f32 %v2421_v26, %v3198_v37  ;;  %v1627_v47 = vpop.f32.mrb[51].mxu1  ;;  %1289 = vst [vmem:[#allocation2 + $0x188] sm:$0xff] %v1225_v7  ;;  %v1808_v22 = vmul.f32 0.2, %v1618_v29  ;;  %v980_v5 = vadd.f32 %v979_v44, %v3204_v50 }
 0x145   :  { %1938 = vst [vmem:[#allocation2 + $0x388] sm:$0xff] %v1873_v12  ;;  %vm1099_vm6 = vcmp.gt.f32.partialorder %v985_v36, 0.0  ;;  %v1163_v38 = vmul.f32 0.2, %v985_v36  ;;  %v1224_v57 = vsel %vm1096_vm4, %v970_v21, %v1160_v56  ;;  %v1628_v37 = vadd.f32 %v1627_v47, %v3204_v50 }
 0x146   :  { %vm1747_vm7 = vcmp.gt.f32.partialorder %v1633_v32, 0.0  ;;  %v1811_v33 = vmul.f32 0.2, %v1633_v32  ;;  %v1872_v40 = vsel %vm1744_vm5, %v1618_v29, %v1808_v22  ;;  %v2322_v41 = vpop.f32.mrb[52].mxu0  ;;  %1288 = vst [vmem:[#allocation2 + $0x180] sm:$0xff] %v1224_v57  ;;  %vm1098_vm8 = vcmp.gt.f32.partialorder %v980_v5, 0.0  ;;  %v451_v29 = vpop.permute.xlu1 %450 }
 0x147   :  { %v2424_v42 = vpop.f32.mrb[52].mxu1  ;;  %1937 = vst [vmem:[#allocation2 + $0x380] sm:$0xff] %v1872_v40  ;;  %v1227_v13 = vsel %vm1099_vm6, %v985_v36, %v1163_v38  ;;  %v995_v23 = vadd.f32 %v2322_v41, %v3210_v30  ;;  %v989_v48 = vpop.f32.mrb[53].mxu0  ;;  %v1162_v9 = vmul.f32 0.2, %v980_v5  ;;  %vm1746_vm9 = vcmp.gt.f32.partialorder %v1628_v37, 0.0 }
 0x148   :  { %v1875_v61 = vsel %vm1747_vm7, %v1633_v32, %v1811_v33  ;;  %v1643_v28 = vadd.f32 %v2424_v42, %v3210_v30  ;;  %v1637_v18 = vpop.f32.mrb[53].mxu1  ;;  %1291 = vst [vmem:[#allocation2 + $0x198] sm:$0xff] %v1227_v13  ;;  %v1810_v10 = vmul.f32 0.2, %v1628_v37  ;;  %v990_v17 = vadd.f32 %v989_v48, %v3216_v11 }
 0x149   :  { %1940 = vst [vmem:[#allocation2 + $0x398] sm:$0xff] %v1875_v61  ;;  %vm1101_vm10 = vcmp.gt.f32.partialorder %v995_v23, 0.0  ;;  %v1165_v50 = vmul.f32 0.2, %v995_v23  ;;  %v1226_v14 = vsel %vm1098_vm8, %v980_v5, %v1162_v9  ;;  %v1638_v30 = vadd.f32 %v1637_v18, %v3216_v11  ;;  %v446_v5 = vpop.permute.xlu0 %445 }
 0x14a   :  { %vm1749_vm11 = vcmp.gt.f32.partialorder %v1643_v28, 0.0  ;;  %v1813_v46 = vmul.f32 0.2, %v1643_v28  ;;  %v1874_v19 = vsel %vm1746_vm9, %v1628_v37, %v1810_v10  ;;  %v2325_v54 = vpop.f32.mrb[54].mxu0  ;;  %1290 = vst [vmem:[#allocation2 + $0x190] sm:$0xff] %v1226_v14  ;;  %vm1100_vm12 = vcmp.gt.f32.partialorder %v990_v17, 0.0 }
 0x14b   :  { %v2427_v35 = vpop.f32.mrb[54].mxu1  ;;  %1939 = vst [vmem:[#allocation2 + $0x390] sm:$0xff] %v1874_v19  ;;  %v1229_v49 = vsel %vm1101_vm10, %v995_v23, %v1165_v50  ;;  %v1005_v51 = vadd.f32 %v2325_v54, %v3222_v45  ;;  %v999_v59 = vpop.f32.mrb[55].mxu0  ;;  %v1164_v60 = vmul.f32 0.2, %v990_v17  ;;  %vm1748_vm13 = vcmp.gt.f32.partialorder %v1638_v30, 0.0 }
 0x14c   :  { %v1877_v24 = vsel %vm1749_vm11, %v1643_v28, %v1813_v46  ;;  %v1653_v58 = vadd.f32 %v2427_v35, %v3222_v45  ;;  %v1647_v15 = vpop.f32.mrb[55].mxu1  ;;  %1293 = vst [vmem:[#allocation2 + $0x1a8] sm:$0xff] %v1229_v49  ;;  %v1812_v20 = vmul.f32 0.2, %v1638_v30  ;;  %v1000_v1 = vadd.f32 %v999_v59, %v3228_v55  ;;  %v461_v19 = vpop.permute.xlu1 %460 }
 0x14d   :  { %1942 = vst [vmem:[#allocation2 + $0x3a8] sm:$0xff] %v1877_v24  ;;  %vm1103_vm14 = vcmp.gt.f32.partialorder %v1005_v51, 0.0  ;;  %v1167_v11 = vmul.f32 0.2, %v1005_v51  ;;  %v1228_v62 = vsel %vm1100_vm12, %v990_v17, %v1164_v60  ;;  %v1648_v0 = vadd.f32 %v1647_v15, %v3228_v55 }
 0x14e   :  { %vm1751_vm15 = vcmp.gt.f32.partialorder %v1653_v58, 0.0  ;;  %v1815_v52 = vmul.f32 0.2, %v1653_v58  ;;  %v1876_v63 = vsel %vm1748_vm13, %v1638_v30, %v1812_v20  ;;  %v2328_v45 = vpop.f32.mrb[56].mxu0  ;;  %1292 = vst [vmem:[#allocation2 + $0x1a0] sm:$0xff] %v1228_v62  ;;  %vm1102_vm0 = vcmp.gt.f32.partialorder %v1000_v1, 0.0 }
 0x14f   :  { %v2430_v53 = vpop.f32.mrb[56].mxu1  ;;  %1941 = vst [vmem:[#allocation2 + $0x3a0] sm:$0xff] %v1876_v63  ;;  %v1231_v31 = vsel %vm1103_vm14, %v1005_v51, %v1167_v11  ;;  %v1015_v3 = vadd.f32 %v2328_v45, %v3234_v4  ;;  %v1009_v43 = vpop.f32.mrb[57].mxu0  ;;  %v1166_v16 = vmul.f32 0.2, %v1000_v1  ;;  %vm1750_vm1 = vcmp.gt.f32.partialorder %v1648_v0, 0.0 }
 0x150   :  { %v1879_v2 = vsel %vm1751_vm15, %v1653_v58, %v1815_v52  ;;  %v1663_v27 = vadd.f32 %v2430_v53, %v3234_v4  ;;  %v1657_v6 = vpop.f32.mrb[57].mxu1  ;;  %1295 = vst [vmem:[#allocation2 + $0x1b8] sm:$0xff] %v1231_v31  ;;  %v1814_v21 = vmul.f32 0.2, %v1648_v0  ;;  %v1010_v12 = vadd.f32 %v1009_v43, %v3240_v39  ;;  %v456_v63 = vpop.permute.xlu0 %455 }
 0x151   :  { %1944 = vst [vmem:[#allocation2 + $0x3b8] sm:$0xff] %v1879_v2  ;;  %vm1105_vm2 = vcmp.gt.f32.partialorder %v1015_v3, 0.0  ;;  %v1169_v55 = vmul.f32 0.2, %v1015_v3  ;;  %v1230_v26 = vsel %vm1102_vm0, %v1000_v1, %v1166_v16  ;;  %v1658_v36 = vadd.f32 %v1657_v6, %v3240_v39 }
 0x152   :  { %vm1753_vm3 = vcmp.gt.f32.partialorder %v1663_v27, 0.0  ;;  %v1817_v8 = vmul.f32 0.2, %v1663_v27  ;;  %v1878_v7 = vsel %vm1750_vm1, %v1648_v0, %v1814_v21  ;;  %v2331_v4 = vpop.f32.mrb[58].mxu0  ;;  %1294 = vst [vmem:[#allocation2 + $0x1b0] sm:$0xff] %v1230_v26  ;;  %vm1104_vm4 = vcmp.gt.f32.partialorder %v1010_v12, 0.0 }
 0x153   :  { %v2433_v32 = vpop.f32.mrb[58].mxu1  ;;  %1943 = vst [vmem:[#allocation2 + $0x3b0] sm:$0xff] %v1878_v7  ;;  %v1233_v44 = vsel %vm1105_vm2, %v1015_v3, %v1169_v55  ;;  %v1025_v56 = vadd.f32 %v2331_v4, %v3246_v34  ;;  %v1019_v38 = vpop.f32.mrb[59].mxu0  ;;  %v1168_v57 = vmul.f32 0.2, %v1010_v12  ;;  %vm1752_vm5 = vcmp.gt.f32.partialorder %v1658_v36, 0.0 }
 0x154   :  { %v1881_v47 = vsel %vm1753_vm3, %v1663_v27, %v1817_v8  ;;  %v1673_v22 = vadd.f32 %v2433_v32, %v3246_v34  ;;  %v1667_v33 = vpop.f32.mrb[59].mxu1  ;;  %1297 = vst [vmem:[#allocation2 + $0x1c8] sm:$0xff] %v1233_v44  ;;  %v1816_v40 = vmul.f32 0.2, %v1658_v36  ;;  %v1020_v13 = vadd.f32 %v1019_v38, %v436_v25 }
 0x155   :  { %1946 = vst [vmem:[#allocation2 + $0x3c8] sm:$0xff] %v1881_v47  ;;  %vm1107_vm6 = vcmp.gt.f32.partialorder %v1025_v56, 0.0  ;;  %v1171_v39 = vmul.f32 0.2, %v1025_v56  ;;  %v1232_v41 = vsel %vm1104_vm4, %v1010_v12, %v1168_v57  ;;  %v1668_v61 = vadd.f32 %v1667_v33, %v436_v25 }
 0x156   :  { %vm1755_vm7 = vcmp.gt.f32.partialorder %v1673_v22, 0.0  ;;  %v1819_v37 = vmul.f32 0.2, %v1673_v22  ;;  %v1880_v42 = vsel %vm1752_vm5, %v1658_v36, %v1816_v40  ;;  %v2334_v23 = vpop.f32.mrb[60].mxu0  ;;  %1296 = vst [vmem:[#allocation2 + $0x1c0] sm:$0xff] %v1232_v41  ;;  %vm1106_vm8 = vcmp.gt.f32.partialorder %v1020_v13, 0.0 }
 0x157   :  { %v2436_v28 = vpop.f32.mrb[60].mxu1  ;;  %1945 = vst [vmem:[#allocation2 + $0x3c0] sm:$0xff] %v1880_v42  ;;  %v1235_v48 = vsel %vm1107_vm6, %v1025_v56, %v1171_v39  ;;  %v1035_v9 = vadd.f32 %v2334_v23, %v451_v29  ;;  %v1029_v34 = vpop.f32.mrb[61].mxu0  ;;  %v1170_v46 = vmul.f32 0.2, %v1020_v13  ;;  %vm1754_vm9 = vcmp.gt.f32.partialorder %v1668_v61, 0.0 }
 0x158   :  { %v1883_v18 = vsel %vm1755_vm7, %v1673_v22, %v1819_v37  ;;  %v1683_v10 = vadd.f32 %v2436_v28, %v451_v29  ;;  %v1677_v50 = vpop.f32.mrb[61].mxu1  ;;  %1299 = vst [vmem:[#allocation2 + $0x1d8] sm:$0xff] %v1235_v48  ;;  %v1818_v14 = vmul.f32 0.2, %v1668_v61  ;;  %v1030_v49 = vadd.f32 %v1029_v34, %v446_v5 }
 0x159   :  { %1948 = vst [vmem:[#allocation2 + $0x3d8] sm:$0xff] %v1883_v18  ;;  %vm1109_vm10 = vcmp.gt.f32.partialorder %v1035_v9, 0.0  ;;  %v1173_v17 = vmul.f32 0.2, %v1035_v9  ;;  %v1234_v54 = vsel %vm1106_vm8, %v1020_v13, %v1170_v46  ;;  %v1678_v24 = vadd.f32 %v1677_v50, %v446_v5 }
 0x15a   :  { %vm1757_vm11 = vcmp.gt.f32.partialorder %v1683_v10, 0.0  ;;  %v1821_v30 = vmul.f32 0.2, %v1683_v10  ;;  %v1882_v35 = vsel %vm1754_vm9, %v1668_v61, %v1818_v14  ;;  %v2337_v51 = vpop.f32.mrb[62].mxu0  ;;  %1298 = vst [vmem:[#allocation2 + $0x1d0] sm:$0xff] %v1234_v54  ;;  %vm1108_vm12 = vcmp.gt.f32.partialorder %v1030_v49, 0.0 }
 0x15b   :  { %v2439_v58 = vpop.f32.mrb[62].mxu1  ;;  %1947 = vst [vmem:[#allocation2 + $0x3d0] sm:$0xff] %v1882_v35  ;;  %v1237_v59 = vsel %vm1109_vm10, %v1035_v9, %v1173_v17  ;;  %v1045_v60 = vadd.f32 %v2337_v51, %v461_v19  ;;  %v1039_v25 = vpop.f32.mrb[63].mxu0  ;;  %v1172_v52 = vmul.f32 0.2, %v1030_v49  ;;  %vm1756_vm13 = vcmp.gt.f32.partialorder %v1678_v24, 0.0 }
 0x15c   :  { %v1885_v15 = vsel %vm1757_vm11, %v1683_v10, %v1821_v30  ;;  %v1693_v20 = vadd.f32 %v2439_v58, %v461_v19  ;;  %v1687_v11 = vpop.f32.mrb[63].mxu1  ;;  %1301 = vst [vmem:[#allocation2 + $0x1e8] sm:$0xff] %v1237_v59  ;;  %v1820_v62 = vmul.f32 0.2, %v1678_v24  ;;  %v1040_v31 = vadd.f32 %v1039_v25, %v456_v63 }
 0x15d   :  { %1950 = vst [vmem:[#allocation2 + $0x3e8] sm:$0xff] %v1885_v15  ;;  %vm1111_vm14 = vcmp.gt.f32.partialorder %v1045_v60, 0.0  ;;  %v1175_v1 = vmul.f32 0.2, %v1045_v60  ;;  %v1236_v45 = vsel %vm1108_vm12, %v1030_v49, %v1172_v52  ;;  %v1688_v2 = vadd.f32 %v1687_v11, %v456_v63 }
 0x15e   :  { %vm1759_vm15 = vcmp.gt.f32.partialorder %v1693_v20, 0.0  ;;  %v1823_v0 = vmul.f32 0.2, %v1693_v20  ;;  %v1884_v53 = vsel %vm1756_vm13, %v1678_v24, %v1820_v62  ;;  %1300 = vst [vmem:[#allocation2 + $0x1e0] sm:$0xff] %v1236_v45  ;;  %vm1110_vm0 = vcmp.gt.f32.partialorder %v1040_v31, 0.0 }
 0x15f   :  { %1949 = vst [vmem:[#allocation2 + $0x3e0] sm:$0xff] %v1884_v53  ;;  %v1239_v3 = vsel %vm1111_vm14, %v1045_v60, %v1175_v1  ;;  %v1174_v43 = vmul.f32 0.2, %v1040_v31  ;;  %vm1758_vm1 = vcmp.gt.f32.partialorder %v1688_v2, 0.0  ;;  %v1822_v6 = vmul.f32 0.2, %v1688_v2 }
 0x160   :  { %v1887_v27 = vsel %vm1759_vm15, %v1693_v20, %v1823_v0  ;;  %1303 = vst [vmem:[#allocation2 + $0x1f8] sm:$0xff] %v1239_v3 }
 0x161   :  { %1952 = vst [vmem:[#allocation2 + $0x3f8] sm:$0xff] %v1887_v27  ;;  %v1238_v16 = vsel %vm1110_vm0, %v1040_v31, %v1174_v43  ;;  %v1886_v21 = vsel %vm1758_vm1, %v1688_v2, %v1822_v6 }
 0x162   :  { %1302 = vst [vmem:[#allocation2 + $0x1f0] sm:$0xff] %v1238_v16  ;;  %1951 = vst [vmem:[#allocation2 + $0x3f0] sm:$0xff] %v1886_v21 }
 0x163   :  { %2465 = shalt.err (!%p2462_p4)
}
 0x164   :  { %s2466_s4 = scalar_lea.hbm %s3275_s3, 16384 }
 0x165   :  { %p2467_p5 = scmp.ne.s32.totalorder %s3275_s3, %s2466_s4  ;;  %p2470_p6 = scmp.lt.u32.totalorder %s2466_s4, %s3275_s3 }
 0x167   :  { %p2472_p7 = pnand %p2470_p6, %p2467_p5 }
 0x169   :  { %2475 = shalt.err (!%p2472_p7)
}
 0x16a   :  { %s2480_s0 = smov 128   ;;  %s2481_s9 = smov 8  }
 0x16b   :  { %1964 = dma.vmem_to_hbm [thread:$0]  %s1959_s27, 16384, %s3275_s3, [#allocation3], %s2480_s0, %s2480_s0, %s2481_s9  }
 0x16c   :  { %2476 = dma.done.wait [#allocation3], 16384  }
 0x16d   :  { %2477 = vsyncadd [#allocation3], 4294950912 }
 0x16e   :  { %1968 = vsyncpa [#allocation3], 1 }

</bundles_post_ra>
